<compile_context>
chip_gen: v7x
topology: tpu7x:2x2x1
jax: 0.10.0
libtpu: 0.0.40
codegen_flags: <defaults>
</compile_context>

<pallas_src>
import functools

import jax
import jax.numpy as jnp
from jax import lax
from jax.experimental import pallas as pl
from jax.experimental.pallas import tpu as pltpu

EPS = 1e-5
LANE = 128


def _round_up(x, m):
    return ((x + m - 1) // m) * m


def _pick_row_chunk(H, W, target_pixels=1024):
    """Largest even divisor of H whose row chunk has <= target_pixels output pixels."""
    best = 2
    for th in range(2, H + 1, 2):
        if H % th == 0 and th * W <= target_pixels:
            best = th
    return best


def _pick_vmem_limit():
    """Generation-aware scoped-VMEM limit (v5e/v6e ~100 MiB, v7x ~48 MiB)."""
    try:
        cap = getattr(pltpu.get_tpu_info(), "vmem_capacity_bytes", None)
    except Exception:
        cap = None
    if not cap:
        return 48 * 1024 * 1024                      # safe on every generation
    return int(max(32 * 1024 * 1024,
                   min(cap - 16 * 1024 * 1024, 100 * 1024 * 1024)))


# --------------------------- in-kernel helpers ---------------------------

def _conv_rows(src_ref, w_ref, bias, y_ref, sum_ref, ssq_ref, *, th, mm_dtype):
    """Row-chunked 3x3 conv (+bias) from a zero-bordered padded source scratch.

    src_ref : (H+2, W+2, Cs) f32 VMEM scratch, border already zeroed + interior filled.
    w_ref   : (9, Cs, Cp) weights in mm_dtype (tap order dy*3+dx).
    bias    : (1, Cp) f32 value.
    y_ref   : (1, H, W, Cp) output block (any dtype).
    sum/ssq : (1, 1, Cp) f32 per-batch BN partial sums (accumulated here).
    """
    Hp2, Wp2, Cs = src_ref.shape
    H, W = Hp2 - 2, Wp2 - 2
    Cp = y_ref.shape[-1]
    nck = H // th

    sum_ref[...] = jnp.zeros_like(sum_ref)
    ssq_ref[...] = jnp.zeros_like(ssq_ref)

    def body(c, carry):
        r0 = pl.multiple_of(c * th, th)
        acc = jnp.zeros((th * W, Cp), jnp.float32)
        # 9 accumulating MXU dots, no im2col slab materialization.
        for dy in range(3):
            for dx in range(3):
                tap = src_ref[pl.ds(r0 + dy, th), dx:dx + W, :]
                tap = tap.reshape(th * W, Cs).astype(mm_dtype)
                acc = acc + jnp.dot(tap, w_ref[dy * 3 + dx],
                                    preferred_element_type=jnp.float32)
        acc = acc + bias
        # One-pass BN stats in f32 (before any narrowing cast for the store).
        # NOTE: var = E[x^2]-mean^2 can lose precision when |mean| >> std; fine here.
        sum_ref[...] += jnp.sum(acc, axis=0).reshape(1, 1, Cp)
        ssq_ref[...] += jnp.sum(acc * acc, axis=0).reshape(1, 1, Cp)
        y_ref[0, pl.ds(r0, th), :, :] = acc.reshape(th, W, Cp).astype(y_ref.dtype)
        return carry

    lax.fori_loop(0, nck, body, 0)


def _zero_border(ref, H, W, C):
    """Zero only the 1-px halo strips of a (H+2, W+2, C) scratch."""
    ref[0:1, :, :] = jnp.zeros((1, W + 2, C), ref.dtype)
    ref[H + 1:H + 2, :, :] = jnp.zeros((1, W + 2, C), ref.dtype)
    ref[1:H + 1, 0:1, :] = jnp.zeros((H, 1, C), ref.dtype)
    ref[1:H + 1, W + 1:W + 2, :] = jnp.zeros((H, 1, C), ref.dtype)


# --------------------------- kernels (one image per grid step) ---------------------------

def _conv1_stats_kernel(x_ref, w_ref, b_ref, y_ref, sum_ref, ssq_ref, xp_ref,
                        *, th, mm_dtype):
    """conv1 (3x3, SAME) + bias, plus per-batch BN1 partial sums."""
    _, H, W, Cin = x_ref.shape
    nck = H // th

    _zero_border(xp_ref, H, W, Cin)

    def fill(c, carry):                              # copy interior rows into the halo scratch
        r0 = pl.multiple_of(c * th, th)
        xp_ref[pl.ds(r0 + 1, th), 1:W + 1, :] = (
            x_ref[0, pl.ds(r0, th), :, :].astype(xp_ref.dtype))
        return carry
    lax.fori_loop(0, nck, fill, 0)

    _conv_rows(xp_ref, w_ref, b_ref[...], y_ref, sum_ref, ssq_ref,
               th=th, mm_dtype=mm_dtype)


def _bn1_conv2_stats_kernel(y1_ref, s_ref, t_ref, w_ref, b_ref,
                            y2_ref, sum_ref, ssq_ref, hp_ref, *, th, mm_dtype):
    """BN1(scale/shift)+ReLU, conv2 (3x3, SAME) + bias, plus per-batch BN2 partial sums."""
    _, H, W, Cp = y2_ref.shape
    nck = H // th

    _zero_border(hp_ref, H, W, Cp)

    s = s_ref[...].reshape(1, 1, Cp)
    t = t_ref[...].reshape(1, 1, Cp)

    def bn_fill(c, carry):
        r0 = pl.multiple_of(c * th, th)
        v = y1_ref[0, pl.ds(r0, th), :, :].astype(jnp.float32)
        h = jnp.maximum(v * s + t, 0.0)
        hp_ref[pl.ds(r0 + 1, th), 1:W + 1, :] = h.astype(hp_ref.dtype)
        return carry
    lax.fori_loop(0, nck, bn_fill, 0)

    _conv_rows(hp_ref, w_ref, b_ref[...], y2_ref, sum_ref, ssq_ref,
               th=th, mm_dtype=mm_dtype)


def _bn2_pool_kernel(y2_ref, s_ref, t_ref, conv_ref, pool_ref, *, th):
    """BN2(scale/shift)+ReLU full-res output, plus 2x2/2 maxpool (row-chunked)."""
    _, H, W, Cp = conv_ref.shape
    nck = H // th
    s = s_ref[...].reshape(1, 1, Cp)
    t = t_ref[...].reshape(1, 1, Cp)

    def body(c, carry):
        r0 = pl.multiple_of(c * th, th)
        p0 = pl.multiple_of(c * (th // 2), th // 2)
        v = y2_ref[0, pl.ds(r0, th), :, :].astype(jnp.float32)
        h = jnp.maximum(v * s + t, 0.0)
        conv_ref[0, pl.ds(r0, th), :, :] = h.astype(conv_ref.dtype)
        q = h.reshape(th // 2, 2, W // 2, 2, Cp)
        pool_ref[0, pl.ds(p0, th // 2), :, :] = (
            jnp.max(jnp.max(q, axis=3), axis=1).astype(pool_ref.dtype))
        return carry

    lax.fori_loop(0, nck, body, 0)


# ------------------------------------- wrapper -------------------------------------

def _bn_affine(part_sum, part_ssq, gamma, beta, count):
    """Fold training-mode BN (batch mean, biased var) into per-channel scale/shift."""
    s = jnp.sum(part_sum, axis=0)                    # (1, Cp)
    q = jnp.sum(part_ssq, axis=0)
    mean = s / count
    var = jnp.maximum(q / count - mean * mean, 0.0)
    scale = gamma * lax.rsqrt(var + EPS)
    shift = beta - mean * scale
    return scale, shift


def downblock_forward(x_nhwc, params, *, matmul_dtype=jnp.bfloat16, row_chunk=None):
    """DownBlock forward.  x_nhwc: (N, H, W, Cin) f32.  Returns (conv_out, pool_out), NHWC.

    matmul_dtype=bf16 (default, bf16-native MXU on v5e/v6e/v7x) also stores the HBM
    intermediates y1/y2 in bf16; pass jnp.float32 for a numerically tight path.
    """
    N, H, W, Cin = x_nhwc.shape
    Cout = params["w1"].shape[-1]
    assert H % 2 == 0 and W % 2 == 0, "MaxPool2d(2,2) needs even H, W"

    th = _pick_row_chunk(H, W) if row_chunk is None else row_chunk
    assert H % th == 0 and th % 2 == 0, "row chunk must be even and divide H"

    Cp = _round_up(Cout, LANE)                       # lane-dense output channels
    f32 = jnp.float32
    mmdt = matmul_dtype
    idt = matmul_dtype                               # HBM intermediates y1/y2 dtype
    rows = N * H * W
    wbytes = jnp.dtype(mmdt).itemsize
    ibytes = jnp.dtype(idt).itemsize

    # ---- wrapper-level layout glue (weights/BN params only; the input stays untouched) ----
    w1 = jnp.pad(params["w1"], ((0, 0), (0, 0), (0, Cp - Cout))).astype(mmdt)          # (9,Cin,Cp)
    w2 = jnp.pad(params["w2"], ((0, 0), (0, Cp - Cout), (0, Cp - Cout))).astype(mmdt)  # (9,Cp,Cp)
    padc = lambda a: jnp.pad(a, ((0, 0), (0, Cp - Cout)))
    b1, g1, be1 = padc(params["b1"]), padc(params["g1"]), padc(params["be1"])
    b2, g2, be2 = padc(params["b2"]), padc(params["g2"]), padc(params["be2"])

    cparams = pltpu.CompilerParams(
        dimension_semantics=("parallel",),           # shard the batch across TCs (v7x megacore)
        vmem_limit_bytes=_pick_vmem_limit())

    # ---- pass 1: conv1 + bias, per-batch BN1 partial sums ----
    y1, s1, q1 = pl.pallas_call(
        functools.partial(_conv1_stats_kernel, th=th, mm_dtype=mmdt),
        grid=(N,),
        in_specs=[
            pl.BlockSpec((1, H, W, Cin), lambda n: (n, 0, 0, 0)),
            pl.BlockSpec((9, Cin, Cp), lambda n: (0, 0, 0)),
            pl.BlockSpec((1, Cp), lambda n: (0, 0)),
        ],
        out_specs=(
            pl.BlockSpec((1, H, W, Cp), lambda n: (n, 0, 0, 0)),
            pl.BlockSpec((1, 1, Cp), lambda n: (n, 0, 0)),
            pl.BlockSpec((1, 1, Cp), lambda n: (n, 0, 0)),
        ),
        out_shape=(
            jax.ShapeDtypeStruct((N, H, W, Cp), idt),
            jax.ShapeDtypeStruct((N, 1, Cp), f32),
            jax.ShapeDtypeStruct((N, 1, Cp), f32),
        ),
        scratch_shapes=[pltpu.VMEM((H + 2, W + 2, Cin), f32)],
        compiler_params=cparams,
        cost_estimate=pl.CostEstimate(
            flops=2 * rows * 9 * Cin * Cp, transcendentals=0,
            bytes_accessed=int(rows * Cin * 4 + 9 * Cin * Cp * wbytes
                               + rows * Cp * ibytes + (2 * N + 1) * Cp * 4)),
    )(x_nhwc, w1, b1)

    scale1, shift1 = _bn_affine(s1, q1, g1, be1, rows)

    # ---- pass 2: BN1+ReLU, conv2 + bias, per-batch BN2 partial sums ----
    y2, s2, q2 = pl.pallas_call(
        functools.partial(_bn1_conv2_stats_kernel, th=th, mm_dtype=mmdt),
        grid=(N,),
        in_specs=[
            pl.BlockSpec((1, H, W, Cp), lambda n: (n, 0, 0, 0)),
            pl.BlockSpec((1, Cp), lambda n: (0, 0)),
            pl.BlockSpec((1, Cp), lambda n: (0, 0)),
            pl.BlockSpec((9, Cp, Cp), lambda n: (0, 0, 0)),
            pl.BlockSpec((1, Cp), lambda n: (0, 0)),
        ],
        out_specs=(
            pl.BlockSpec((1, H, W, Cp), lambda n: (n, 0, 0, 0)),
            pl.BlockSpec((1, 1, Cp), lambda n: (n, 0, 0)),
            pl.BlockSpec((1, 1, Cp), lambda n: (n, 0, 0)),
        ),
        out_shape=(
            jax.ShapeDtypeStruct((N, H, W, Cp), idt),
            jax.ShapeDtypeStruct((N, 1, Cp), f32),
            jax.ShapeDtypeStruct((N, 1, Cp), f32),
        ),
        scratch_shapes=[pltpu.VMEM((H + 2, W + 2, Cp), f32)],
        compiler_params=cparams,
        cost_estimate=pl.CostEstimate(
            flops=2 * rows * 9 * Cp * Cp + 4 * rows * Cp, transcendentals=0,
            bytes_accessed=int(2 * rows * Cp * ibytes + 9 * Cp * Cp * wbytes
                               + (2 * N + 5) * Cp * 4)),
    )(y1, scale1, shift1, w2, b2)

    scale2, shift2 = _bn_affine(s2, q2, g2, be2, rows)

    # ---- pass 3: BN2+ReLU full-res output + 2x2 maxpool ----
    conv_p, pool_p = pl.pallas_call(
        functools.partial(_bn2_pool_kernel, th=th),
        grid=(N,),
        in_specs=[
            pl.BlockSpec((1, H, W, Cp), lambda n: (n, 0, 0, 0)),
            pl.BlockSpec((1, Cp), lambda n: (0, 0)),
            pl.BlockSpec((1, Cp), lambda n: (0, 0)),
        ],
        out_specs=(
            pl.BlockSpec((1, H, W, Cp), lambda n: (n, 0, 0, 0)),
            pl.BlockSpec((1, H // 2, W // 2, Cp), lambda n: (n, 0, 0, 0)),
        ),
        out_shape=(
            jax.ShapeDtypeStruct((N, H, W, Cp), f32),
            jax.ShapeDtypeStruct((N, H // 2, W // 2, Cp), f32),
        ),
        compiler_params=cparams,
        cost_estimate=pl.CostEstimate(
            flops=5 * rows * Cp, transcendentals=0,
            bytes_accessed=int(rows * Cp * ibytes + (rows + rows // 4 + 2) * Cp * 4)),
    )(y2, scale2, shift2)

    # strip the lane padding (wrapper-level glue)
    return conv_p[..., :Cout], pool_p[..., :Cout]


# ---------------- pure-JAX reference (for correctness check) ----------------
def _ref_downblock(x_nhwc, params):
    def conv3x3(x, w_flat, b):
        w = w_flat.reshape(3, 3, w_flat.shape[1], w_flat.shape[2])   # HWIO
        y = lax.conv_general_dilated(
            x, w, window_strides=(1, 1), padding=((1, 1), (1, 1)),
            dimension_numbers=("NHWC", "HWIO", "NHWC"))
        return y + b.reshape(1, 1, 1, -1)

    def bn_relu(y, g, be):
        m = jnp.mean(y, axis=(0, 1, 2), keepdims=True)
        v = jnp.mean((y - m) ** 2, axis=(0, 1, 2), keepdims=True)
        out = (y - m) * lax.rsqrt(v + EPS) * g.reshape(1, 1, 1, -1) + be.reshape(1, 1, 1, -1)
        return jnp.maximum(out, 0.0)

    h = bn_relu(conv3x3(x_nhwc, params["w1"], params["b1"]), params["g1"], params["be1"])
    h = bn_relu(conv3x3(h, params["w2"], params["b2"]), params["g2"], params["be2"])
    N, H, W, C = h.shape
    p = jnp.max(h.reshape(N, H // 2, 2, W // 2, 2, C), axis=(2, 4))
    return h, p


if __name__ == "__main__":
    N, Cin, Cout, H, W = 2, 4, 8, 16, 16

    key = jax.random.PRNGKey(0)
    kx, kw1, kb1, kw2, kb2 = jax.random.split(key, 5)

    # input in PyTorch NCHW convention, transposed to NHWC for the kernel (glue)
    x_nchw = jax.random.normal(kx, (N, Cin, H, W), jnp.float32)
    x_nhwc = jnp.transpose(x_nchw, (0, 2, 3, 1))

    # conv weights stored as (9, Cin, Cout) == flattened (kh, kw, Cin, Cout)
    params = {
        "w1": 0.1 * jax.random.normal(kw1, (9, Cin, Cout), jnp.float32),
        "b1": 0.1 * jax.random.normal(kb1, (1, Cout), jnp.float32),
        "g1": jnp.ones((1, Cout), jnp.float32),    # BatchNorm weight init
        "be1": jnp.zeros((1, Cout), jnp.float32),  # BatchNorm bias init
        "w2": 0.1 * jax.random.normal(kw2, (9, Cout, Cout), jnp.float32),
        "b2": 0.1 * jax.random.normal(kb2, (1, Cout), jnp.float32),
        "g2": jnp.ones((1, Cout), jnp.float32),
        "be2": jnp.zeros((1, Cout), jnp.float32),
    }

    ref_conv, ref_pool = _ref_downblock(x_nhwc, params)

    # f32 path, default row-chunk policy: tight correctness check.
    conv_out, pool_out = jax.block_until_ready(
        downblock_forward(x_nhwc, params, matmul_dtype=jnp.float32))
    assert conv_out.shape == (N, H, W, Cout)
    assert pool_out.shape == (N, H // 2, W // 2, Cout)
    err_c = float(jnp.max(jnp.abs(conv_out - ref_conv)))
    err_p = float(jnp.max(jnp.abs(pool_out - ref_pool)))
    assert err_c < 1e-3 and err_p < 1e-3, (err_c, err_p)

    # f32 path with a forced 4-row chunk: exercises the in-kernel M-tiling loop.
    conv_c4, pool_c4 = jax.block_until_ready(
        downblock_forward(x_nhwc, params, matmul_dtype=jnp.float32, row_chunk=4))
    err_c4 = float(jnp.max(jnp.abs(conv_c4 - ref_conv)))
    err_p4 = float(jnp.max(jnp.abs(pool_c4 - ref_pool)))
    assert err_c4 < 1e-3 and err_p4 < 1e-3, (err_c4, err_p4)

    # default fast path (bf16 MXU + bf16 HBM intermediates): looser tolerance.
    conv_bf, pool_bf = jax.block_until_ready(downblock_forward(x_nhwc, params))
    err_cb = float(jnp.max(jnp.abs(conv_bf - ref_conv)))
    err_pb = float(jnp.max(jnp.abs(pool_bf - ref_pool)))
    assert err_cb < 0.3 and err_pb < 0.3, (err_cb, err_pb)

    print("KERNEL_OK")
</pallas_src>

<mosaic_0001>
module attributes {stable_mosaic.version = 11 : i64} {
  func.func @_conv1_stats_kernel(%arg0: i32, %arg1: memref<1x16x16x4xf32, #tpu.memory_space<vmem>>, %arg2: memref<9x4x128xf32, #tpu.memory_space<vmem>>, %arg3: memref<1x128xf32, #tpu.memory_space<vmem>>, %arg4: memref<1x16x16x128xf32, #tpu.memory_space<vmem>>, %arg5: memref<1x1x128xf32, #tpu.memory_space<vmem>>, %arg6: memref<1x1x128xf32, #tpu.memory_space<vmem>>, %arg7: memref<18x18x4xf32, #tpu.memory_space<vmem>>) attributes {dimension_semantics = [#tpu.dimension_semantics<parallel>], iteration_bounds = array<i64: 2>, scalar_prefetch = 0 : i64, scratch_operands = 1 : i64, tpu.core_type = #tpu.core_type<tc>, window_params = [{transform_indices = @transform_0, window_bounds = array<i64: 1, 16, 16, 4>}, {pipeline_mode = #tpu.pipeline_mode<synchronous>, transform_indices = @transform_1, window_bounds = array<i64: 9, 4, 128>}, {pipeline_mode = #tpu.pipeline_mode<synchronous>, transform_indices = @transform_2, window_bounds = array<i64: 1, 128>}, {transform_indices = @transform_3, window_bounds = array<i64: 1, 16, 16, 128>}, {transform_indices = @transform_4, window_bounds = array<i64: 1, 1, 128>}, {transform_indices = @transform_5, window_bounds = array<i64: 1, 1, 128>}]} {
    %cst = arith.constant 0.000000e+00 : f32
    %0 = vector.broadcast %cst : f32 to vector<1x18x4xf32>
    %c0 = arith.constant 0 : index
    %c0_0 = arith.constant 0 : index
    %c0_1 = arith.constant 0 : index
    %1 = vector.load %arg7[%c0, %c0_0, %c0_1] : memref<18x18x4xf32, #tpu.memory_space<vmem>>, vector<1x18x4xf32>
    tpu.vector_store %arg7[%c0, %c0_0, %c0_1], %0 {strides = array<i32>} : memref<18x18x4xf32, #tpu.memory_space<vmem>>, vector<1x18x4xf32>,
    %cst_2 = arith.constant 0.000000e+00 : f32
    %2 = vector.broadcast %cst_2 : f32 to vector<1x18x4xf32>
    %c17 = arith.constant 17 : index
    %c0_3 = arith.constant 0 : index
    %c0_4 = arith.constant 0 : index
    %3 = vector.load %arg7[%c17, %c0_3, %c0_4] : memref<18x18x4xf32, #tpu.memory_space<vmem>>, vector<1x18x4xf32>
    tpu.vector_store %arg7[%c17, %c0_3, %c0_4], %2 {strides = array<i32>} : memref<18x18x4xf32, #tpu.memory_space<vmem>>, vector<1x18x4xf32>,
    %cst_5 = arith.constant 0.000000e+00 : f32
    %4 = vector.broadcast %cst_5 : f32 to vector<16x1x4xf32>
    %c1 = arith.constant 1 : index
    %c0_6 = arith.constant 0 : index
    %c0_7 = arith.constant 0 : index
    %5 = vector.load %arg7[%c1, %c0_6, %c0_7] : memref<18x18x4xf32, #tpu.memory_space<vmem>>, vector<16x1x4xf32>
    tpu.vector_store %arg7[%c1, %c0_6, %c0_7], %4 {strides = array<i32>} : memref<18x18x4xf32, #tpu.memory_space<vmem>>, vector<16x1x4xf32>,
    %cst_8 = arith.constant 0.000000e+00 : f32
    %6 = vector.broadcast %cst_8 : f32 to vector<16x1x4xf32>
    %c1_9 = arith.constant 1 : index
    %c17_10 = arith.constant 17 : index
    %c0_11 = arith.constant 0 : index
    %7 = vector.load %arg7[%c1_9, %c17_10, %c0_11] : memref<18x18x4xf32, #tpu.memory_space<vmem>>, vector<16x1x4xf32>
    tpu.vector_store %arg7[%c1_9, %c17_10, %c0_11], %6 {strides = array<i32>} : memref<18x18x4xf32, #tpu.memory_space<vmem>>, vector<16x1x4xf32>,
    %c0_i32 = arith.constant 0 : i32
    %c16_i32 = arith.constant 16 : i32
    %8 = arith.muli %c0_i32, %c16_i32 : i32
    %9 = tpu.assume_multiple %8, 16 : i32
    %c0_12 = arith.constant 0 : index
    %10 = arith.index_cast %9 : i32 to index
    %c0_13 = arith.constant 0 : index
    %c0_14 = arith.constant 0 : index
    %11 = vector.load %arg1[%c0_12, %10, %c0_13, %c0_14] : memref<1x16x16x4xf32, #tpu.memory_space<vmem>>, vector<1x16x16x4xf32>
    %12 = vector.shape_cast %11 : vector<1x16x16x4xf32> to vector<16x16x4xf32>
    %c1_i32 = arith.constant 1 : i32
    %13 = arith.addi %9, %c1_i32 : i32
    %14 = arith.index_cast %13 : i32 to index
    %c1_15 = arith.constant 1 : index
    %c0_16 = arith.constant 0 : index
    %15 = vector.load %arg7[%14, %c1_15, %c0_16] : memref<18x18x4xf32, #tpu.memory_space<vmem>>, vector<16x16x4xf32>
    tpu.vector_store %arg7[%14, %c1_15, %c0_16], %12 {strides = array<i32>} : memref<18x18x4xf32, #tpu.memory_space<vmem>>, vector<16x16x4xf32>,
    %c1_i32_17 = arith.constant 1 : i32
    %c0_18 = arith.constant 0 : index
    %c0_19 = arith.constant 0 : index
    %16 = vector.load %arg3[%c0_18, %c0_19] : memref<1x128xf32, #tpu.memory_space<vmem>>, vector<1x128xf32>
    %cst_20 = arith.constant 0.000000e+00 : f32
    %17 = vector.broadcast %cst_20 : f32 to vector<1x1x128xf32>
    %c0_21 = arith.constant 0 : index
    %c0_22 = arith.constant 0 : index
    %c0_23 = arith.constant 0 : index
    %18 = vector.load %arg5[%c0_21, %c0_22, %c0_23] : memref<1x1x128xf32, #tpu.memory_space<vmem>>, vector<1x1x128xf32>
    tpu.vector_store %arg5[%c0_21, %c0_22, %c0_23], %17 {strides = array<i32>} : memref<1x1x128xf32, #tpu.memory_space<vmem>>, vector<1x1x128xf32>,
    %cst_24 = arith.constant 0.000000e+00 : f32
    %19 = vector.broadcast %cst_24 : f32 to vector<1x1x128xf32>
    %c0_25 = arith.constant 0 : index
    %c0_26 = arith.constant 0 : index
    %c0_27 = arith.constant 0 : index
    %20 = vector.load %arg6[%c0_25, %c0_26, %c0_27] : memref<1x1x128xf32, #tpu.memory_space<vmem>>, vector<1x1x128xf32>
    tpu.vector_store %arg6[%c0_25, %c0_26, %c0_27], %19 {strides = array<i32>} : memref<1x1x128xf32, #tpu.memory_space<vmem>>, vector<1x1x128xf32>,
    %c0_i32_28 = arith.constant 0 : i32
    %c16_i32_29 = arith.constant 16 : i32
    %21 = arith.muli %c0_i32_28, %c16_i32_29 : i32
    %22 = tpu.assume_multiple %21, 16 : i32
    %cst_30 = arith.constant 0.000000e+00 : f32
    %23 = vector.broadcast %cst_30 : f32 to vector<256x128xf32>
    %c0_i32_31 = arith.constant 0 : i32
    %24 = arith.addi %22, %c0_i32_31 : i32
    %25 = arith.index_cast %24 : i32 to index
    %c0_32 = arith.constant 0 : index
    %c0_33 = arith.constant 0 : index
    %26 = vector.load %arg7[%25, %c0_32, %c0_33] : memref<18x18x4xf32, #tpu.memory_space<vmem>>, vector<16x16x4xf32>
    %27 = vector.shape_cast %26 : vector<16x16x4xf32> to vector<256x4xf32>
    %c0_34 = arith.constant 0 : index
    %c0_35 = arith.constant 0 : index
    %c0_36 = arith.constant 0 : index
    %28 = vector.load %arg2[%c0_34, %c0_35, %c0_36] : memref<9x4x128xf32, #tpu.memory_space<vmem>>, vector<1x4x128xf32>
    %29 = vector.shape_cast %28 : vector<1x4x128xf32> to vector<4x128xf32>
    %cst_37 = arith.constant dense<0.000000e+00> : vector<256x128xf32>
    %30 = tpu.matmul %27, %29, %cst_37 {dimension_numbers = #tpu.dot_dimension_numbers<[1], [0], [0], [1], [0, 0, 1, 1], [], []>} : vector<256x4xf32>, vector<4x128xf32>, vector<256x128xf32> -> vector<256x128xf32>
    %31 = arith.addf %23, %30 : vector<256x128xf32>
    %c0_i32_38 = arith.constant 0 : i32
    %32 = arith.addi %22, %c0_i32_38 : i32
    %33 = arith.index_cast %32 : i32 to index
    %c1_39 = arith.constant 1 : index
    %c0_40 = arith.constant 0 : index
    %34 = vector.load %arg7[%33, %c1_39, %c0_40] : memref<18x18x4xf32, #tpu.memory_space<vmem>>, vector<16x16x4xf32>
    %35 = vector.shape_cast %34 : vector<16x16x4xf32> to vector<256x4xf32>
    %c1_41 = arith.constant 1 : index
    %c0_42 = arith.constant 0 : index
    %c0_43 = arith.constant 0 : index
    %36 = vector.load %arg2[%c1_41, %c0_42, %c0_43] : memref<9x4x128xf32, #tpu.memory_space<vmem>>, vector<1x4x128xf32>
    %37 = vector.shape_cast %36 : vector<1x4x128xf32> to vector<4x128xf32>
    %cst_44 = arith.constant dense<0.000000e+00> : vector<256x128xf32>
    %38 = tpu.matmul %35, %37, %cst_44 {dimension_numbers = #tpu.dot_dimension_numbers<[1], [0], [0], [1], [0, 0, 1, 1], [], []>} : vector<256x4xf32>, vector<4x128xf32>, vector<256x128xf32> -> vector<256x128xf32>
    %39 = arith.addf %31, %38 : vector<256x128xf32>
    %c0_i32_45 = arith.constant 0 : i32
    %40 = arith.addi %22, %c0_i32_45 : i32
    %41 = arith.index_cast %40 : i32 to index
    %c2 = arith.constant 2 : index
    %c0_46 = arith.constant 0 : index
    %42 = vector.load %arg7[%41, %c2, %c0_46] : memref<18x18x4xf32, #tpu.memory_space<vmem>>, vector<16x16x4xf32>
    %43 = vector.shape_cast %42 : vector<16x16x4xf32> to vector<256x4xf32>
    %c2_47 = arith.constant 2 : index
    %c0_48 = arith.constant 0 : index
    %c0_49 = arith.constant 0 : index
    %44 = vector.load %arg2[%c2_47, %c0_48, %c0_49] : memref<9x4x128xf32, #tpu.memory_space<vmem>>, vector<1x4x128xf32>
    %45 = vector.shape_cast %44 : vector<1x4x128xf32> to vector<4x128xf32>
    %cst_50 = arith.constant dense<0.000000e+00> : vector<256x128xf32>
    %46 = tpu.matmul %43, %45, %cst_50 {dimension_numbers = #tpu.dot_dimension_numbers<[1], [0], [0], [1], [0, 0, 1, 1], [], []>} : vector<256x4xf32>, vector<4x128xf32>, vector<256x128xf32> -> vector<256x128xf32>
    %47 = arith.addf %39, %46 : vector<256x128xf32>
    %c1_i32_51 = arith.constant 1 : i32
    %48 = arith.addi %22, %c1_i32_51 : i32
    %49 = arith.index_cast %48 : i32 to index
    %c0_52 = arith.constant 0 : index
    %c0_53 = arith.constant 0 : index
    %50 = vector.load %arg7[%49, %c0_52, %c0_53] : memref<18x18x4xf32, #tpu.memory_space<vmem>>, vector<16x16x4xf32>
    %51 = vector.shape_cast %50 : vector<16x16x4xf32> to vector<256x4xf32>
    %c3 = arith.constant 3 : index
    %c0_54 = arith.constant 0 : index
    %c0_55 = arith.constant 0 : index
    %52 = vector.load %arg2[%c3, %c0_54, %c0_55] : memref<9x4x128xf32, #tpu.memory_space<vmem>>, vector<1x4x128xf32>
    %53 = vector.shape_cast %52 : vector<1x4x128xf32> to vector<4x128xf32>
    %cst_56 = arith.constant dense<0.000000e+00> : vector<256x128xf32>
    %54 = tpu.matmul %51, %53, %cst_56 {dimension_numbers = #tpu.dot_dimension_numbers<[1], [0], [0], [1], [0, 0, 1, 1], [], []>} : vector<256x4xf32>, vector<4x128xf32>, vector<256x128xf32> -> vector<256x128xf32>
    %55 = arith.addf %47, %54 : vector<256x128xf32>
    %c1_i32_57 = arith.constant 1 : i32
    %56 = arith.addi %22, %c1_i32_57 : i32
    %57 = arith.index_cast %56 : i32 to index
    %c1_58 = arith.constant 1 : index
    %c0_59 = arith.constant 0 : index
    %58 = vector.load %arg7[%57, %c1_58, %c0_59] : memref<18x18x4xf32, #tpu.memory_space<vmem>>, vector<16x16x4xf32>
    %59 = vector.shape_cast %58 : vector<16x16x4xf32> to vector<256x4xf32>
    %c4 = arith.constant 4 : index
    %c0_60 = arith.constant 0 : index
    %c0_61 = arith.constant 0 : index
    %60 = vector.load %arg2[%c4, %c0_60, %c0_61] : memref<9x4x128xf32, #tpu.memory_space<vmem>>, vector<1x4x128xf32>
    %61 = vector.shape_cast %60 : vector<1x4x128xf32> to vector<4x128xf32>
    %cst_62 = arith.constant dense<0.000000e+00> : vector<256x128xf32>
    %62 = tpu.matmul %59, %61, %cst_62 {dimension_numbers = #tpu.dot_dimension_numbers<[1], [0], [0], [1], [0, 0, 1, 1], [], []>} : vector<256x4xf32>, vector<4x128xf32>, vector<256x128xf32> -> vector<256x128xf32>
    %63 = arith.addf %55, %62 : vector<256x128xf32>
    %c1_i32_63 = arith.constant 1 : i32
    %64 = arith.addi %22, %c1_i32_63 : i32
    %65 = arith.index_cast %64 : i32 to index
    %c2_64 = arith.constant 2 : index
    %c0_65 = arith.constant 0 : index
    %66 = vector.load %arg7[%65, %c2_64, %c0_65] : memref<18x18x4xf32, #tpu.memory_space<vmem>>, vector<16x16x4xf32>
    %67 = vector.shape_cast %66 : vector<16x16x4xf32> to vector<256x4xf32>
    %c5 = arith.constant 5 : index
    %c0_66 = arith.constant 0 : index
    %c0_67 = arith.constant 0 : index
    %68 = vector.load %arg2[%c5, %c0_66, %c0_67] : memref<9x4x128xf32, #tpu.memory_space<vmem>>, vector<1x4x128xf32>
    %69 = vector.shape_cast %68 : vector<1x4x128xf32> to vector<4x128xf32>
    %cst_68 = arith.constant dense<0.000000e+00> : vector<256x128xf32>
    %70 = tpu.matmul %67, %69, %cst_68 {dimension_numbers = #tpu.dot_dimension_numbers<[1], [0], [0], [1], [0, 0, 1, 1], [], []>} : vector<256x4xf32>, vector<4x128xf32>, vector<256x128xf32> -> vector<256x128xf32>
    %71 = arith.addf %63, %70 : vector<256x128xf32>
    %c2_i32 = arith.constant 2 : i32
    %72 = arith.addi %22, %c2_i32 : i32
    %73 = arith.index_cast %72 : i32 to index
    %c0_69 = arith.constant 0 : index
    %c0_70 = arith.constant 0 : index
    %74 = vector.load %arg7[%73, %c0_69, %c0_70] : memref<18x18x4xf32, #tpu.memory_space<vmem>>, vector<16x16x4xf32>
    %75 = vector.shape_cast %74 : vector<16x16x4xf32> to vector<256x4xf32>
    %c6 = arith.constant 6 : index
    %c0_71 = arith.constant 0 : index
    %c0_72 = arith.constant 0 : index
    %76 = vector.load %arg2[%c6, %c0_71, %c0_72] : memref<9x4x128xf32, #tpu.memory_space<vmem>>, vector<1x4x128xf32>
    %77 = vector.shape_cast %76 : vector<1x4x128xf32> to vector<4x128xf32>
    %cst_73 = arith.constant dense<0.000000e+00> : vector<256x128xf32>
    %78 = tpu.matmul %75, %77, %cst_73 {dimension_numbers = #tpu.dot_dimension_numbers<[1], [0], [0], [1], [0, 0, 1, 1], [], []>} : vector<256x4xf32>, vector<4x128xf32>, vector<256x128xf32> -> vector<256x128xf32>
    %79 = arith.addf %71, %78 : vector<256x128xf32>
    %c2_i32_74 = arith.constant 2 : i32
    %80 = arith.addi %22, %c2_i32_74 : i32
    %81 = arith.index_cast %80 : i32 to index
    %c1_75 = arith.constant 1 : index
    %c0_76 = arith.constant 0 : index
    %82 = vector.load %arg7[%81, %c1_75, %c0_76] : memref<18x18x4xf32, #tpu.memory_space<vmem>>, vector<16x16x4xf32>
    %83 = vector.shape_cast %82 : vector<16x16x4xf32> to vector<256x4xf32>
    %c7 = arith.constant 7 : index
    %c0_77 = arith.constant 0 : index
    %c0_78 = arith.constant 0 : index
    %84 = vector.load %arg2[%c7, %c0_77, %c0_78] : memref<9x4x128xf32, #tpu.memory_space<vmem>>, vector<1x4x128xf32>
    %85 = vector.shape_cast %84 : vector<1x4x128xf32> to vector<4x128xf32>
    %cst_79 = arith.constant dense<0.000000e+00> : vector<256x128xf32>
    %86 = tpu.matmul %83, %85, %cst_79 {dimension_numbers = #tpu.dot_dimension_numbers<[1], [0], [0], [1], [0, 0, 1, 1], [], []>} : vector<256x4xf32>, vector<4x128xf32>, vector<256x128xf32> -> vector<256x128xf32>
    %87 = arith.addf %79, %86 : vector<256x128xf32>
    %c2_i32_80 = arith.constant 2 : i32
    %88 = arith.addi %22, %c2_i32_80 : i32
    %89 = arith.index_cast %88 : i32 to index
    %c2_81 = arith.constant 2 : index
    %c0_82 = arith.constant 0 : index
    %90 = vector.load %arg7[%89, %c2_81, %c0_82] : memref<18x18x4xf32, #tpu.memory_space<vmem>>, vector<16x16x4xf32>
    %91 = vector.shape_cast %90 : vector<16x16x4xf32> to vector<256x4xf32>
    %c8 = arith.constant 8 : index
    %c0_83 = arith.constant 0 : index
    %c0_84 = arith.constant 0 : index
    %92 = vector.load %arg2[%c8, %c0_83, %c0_84] : memref<9x4x128xf32, #tpu.memory_space<vmem>>, vector<1x4x128xf32>
    %93 = vector.shape_cast %92 : vector<1x4x128xf32> to vector<4x128xf32>
    %cst_85 = arith.constant dense<0.000000e+00> : vector<256x128xf32>
    %94 = tpu.matmul %91, %93, %cst_85 {dimension_numbers = #tpu.dot_dimension_numbers<[1], [0], [0], [1], [0, 0, 1, 1], [], []>} : vector<256x4xf32>, vector<4x128xf32>, vector<256x128xf32> -> vector<256x128xf32>
    %95 = arith.addf %87, %94 : vector<256x128xf32>
    %96 = vector.broadcast %16 : vector<1x128xf32> to vector<256x128xf32>
    %97 = arith.addf %95, %96 : vector<256x128xf32>
    %c0_86 = arith.constant 0 : index
    %c0_87 = arith.constant 0 : index
    %c0_88 = arith.constant 0 : index
    %98 = vector.load %arg5[%c0_86, %c0_87, %c0_88] : memref<1x1x128xf32, #tpu.memory_space<vmem>>, vector<1x1x128xf32>
    %cst_89 = arith.constant dense<0.000000e+00> : vector<128xf32>
    %99 = vector.multi_reduction <add>, %97, %cst_89 [0] : vector<256x128xf32> to vector<128xf32>
    %100 = vector.shape_cast %99 : vector<128xf32> to vector<1x1x128xf32>
    %101 = arith.addf %98, %100 : vector<1x1x128xf32>
    %c0_90 = arith.constant 0 : index
    %c0_91 = arith.constant 0 : index
    %c0_92 = arith.constant 0 : index
    %102 = vector.load %arg5[%c0_90, %c0_91, %c0_92] : memref<1x1x128xf32, #tpu.memory_space<vmem>>, vector<1x1x128xf32>
    tpu.vector_store %arg5[%c0_90, %c0_91, %c0_92], %101 {strides = array<i32>} : memref<1x1x128xf32, #tpu.memory_space<vmem>>, vector<1x1x128xf32>,
    %c0_93 = arith.constant 0 : index
    %c0_94 = arith.constant 0 : index
    %c0_95 = arith.constant 0 : index
    %103 = vector.load %arg6[%c0_93, %c0_94, %c0_95] : memref<1x1x128xf32, #tpu.memory_space<vmem>>, vector<1x1x128xf32>
    %104 = arith.mulf %97, %97 : vector<256x128xf32>
    %cst_96 = arith.constant dense<0.000000e+00> : vector<128xf32>
    %105 = vector.multi_reduction <add>, %104, %cst_96 [0] : vector<256x128xf32> to vector<128xf32>
    %106 = vector.shape_cast %105 : vector<128xf32> to vector<1x1x128xf32>
    %107 = arith.addf %103, %106 : vector<1x1x128xf32>
    %c0_97 = arith.constant 0 : index
    %c0_98 = arith.constant 0 : index
    %c0_99 = arith.constant 0 : index
    %108 = vector.load %arg6[%c0_97, %c0_98, %c0_99] : memref<1x1x128xf32, #tpu.memory_space<vmem>>, vector<1x1x128xf32>
    tpu.vector_store %arg6[%c0_97, %c0_98, %c0_99], %107 {strides = array<i32>} : memref<1x1x128xf32, #tpu.memory_space<vmem>>, vector<1x1x128xf32>,
    %109 = vector.shape_cast %97 : vector<256x128xf32> to vector<16x16x128xf32>
    %c0_100 = arith.constant 0 : index
    %110 = arith.index_cast %22 : i32 to index
    %c0_101 = arith.constant 0 : index
    %c0_102 = arith.constant 0 : index
    %111 = vector.load %arg4[%c0_100, %110, %c0_101, %c0_102] : memref<1x16x16x128xf32, #tpu.memory_space<vmem>>, vector<1x16x16x128xf32>
    %112 = vector.shape_cast %111 : vector<1x16x16x128xf32> to vector<16x16x128xf32>
    %113 = vector.shape_cast %109 : vector<16x16x128xf32> to vector<1x16x16x128xf32>
    tpu.vector_store %arg4[%c0_100, %110, %c0_101, %c0_102], %113 {strides = array<i32>} : memref<1x16x16x128xf32, #tpu.memory_space<vmem>>, vector<1x16x16x128xf32>,
    %c1_i32_103 = arith.constant 1 : i32
    return
  }
  func.func @transform_0(%arg0: i32) -> (i32, i32, i32, i32) {
    %c0_i32 = arith.constant 0 : i32
    %c0_i32_0 = arith.constant 0 : i32
    %c0_i32_1 = arith.constant 0 : i32
    %c0_i32_2 = arith.constant 0 : i32
    return %arg0, %c0_i32, %c0_i32_0, %c0_i32_1 : i32, i32, i32, i32
  }
  func.func @transform_1(%arg0: i32) -> (i32, i32, i32) {
    %c0_i32 = arith.constant 0 : i32
    %c0_i32_0 = arith.constant 0 : i32
    %c0_i32_1 = arith.constant 0 : i32
    %c0_i32_2 = arith.constant 0 : i32
    return %c0_i32, %c0_i32_0, %c0_i32_1 : i32, i32, i32
  }
  func.func @transform_2(%arg0: i32) -> (i32, i32) {
    %c0_i32 = arith.constant 0 : i32
    %c0_i32_0 = arith.constant 0 : i32
    %c0_i32_1 = arith.constant 0 : i32
    return %c0_i32, %c0_i32_0 : i32, i32
  }
  func.func @transform_3(%arg0: i32) -> (i32, i32, i32, i32) {
    %c0_i32 = arith.constant 0 : i32
    %c0_i32_0 = arith.constant 0 : i32
    %c0_i32_1 = arith.constant 0 : i32
    %c0_i32_2 = arith.constant 0 : i32
    return %arg0, %c0_i32, %c0_i32_0, %c0_i32_1 : i32, i32, i32, i32
  }
  func.func @transform_4(%arg0: i32) -> (i32, i32, i32) {
    %c0_i32 = arith.constant 0 : i32
    %c0_i32_0 = arith.constant 0 : i32
    %c0_i32_1 = arith.constant 0 : i32
    return %arg0, %c0_i32, %c0_i32_0 : i32, i32, i32
  }
  func.func @transform_5(%arg0: i32) -> (i32, i32, i32) {
    %c0_i32 = arith.constant 0 : i32
    %c0_i32_0 = arith.constant 0 : i32
    %c0_i32_1 = arith.constant 0 : i32
    return %arg0, %c0_i32, %c0_i32_0 : i32, i32, i32
  }
}

</mosaic_0001>

<bundles_post_ra>
// kernel: tpu_custom_call.1
= control target key start
LH: loop header
LB: loop body
LE: loop exit
PB: predicated region body
PF: predicated region fallthrough
CT: control target
= control target key end

     0   :  { %11 = vsyncpa [#allocation4], 0  ;;  %s6942_s0 = inlined_call_operand.vmem [shape: f32[2,16,16,4], index: 0, kind: input, shape index: {}]   ;;  %s6943_s1 = inlined_call_operand.vmem [shape: f32[9,4,128], index: 1, kind: input, shape index: {}]   ;;  %s6944_s2 = inlined_call_operand.vmem [shape: f32[1,128], index: 2, kind: input, shape index: {}]   ;;  %s6945_s3 = inlined_call_operand.hbm [shape: f32[2,16,16,128], index: 3, kind: output, shape index: {0}]   ;;  %s6946_s4 = inlined_call_operand.hbm [shape: f32[2,1,128], index: 4, kind: output, shape index: {1}]   ;;  %s6947_s5 = inlined_call_operand.hbm [shape: f32[2,1,128], index: 5, kind: output, shape index: {2}]  }
   0x1   :  { %13 = vsyncpa [#allocation4 + $0x1], 0 }
   0x2   :  { %14 = vsyncpa [#allocation6], 0 }
   0x3   :  { %16 = vsyncpa [#allocation6 + $0x1], 0  ;;  %s5692_s18 = smov 0   ;;  %s5694_s19 = smov 0  }
   0x4   :  { %s5696_s20 = smov 0   ;;  %s5698_s21 = smov 0  }
   0x5 LB: > { %s5713_s22 = sadd.s32 4294967295, %s5654_s21   ;;  %s4153_s23 = sadd.s32 4294967294, %s5654_s21   ;;  %s5654_s21 = sphi %s5698_s21, %s7062_s21   ;;  %s5650_s20 = sphi %s5696_s20, %s7061_s20   ;;  %s5646_s19 = sphi %s5694_s19, %s7060_s19   ;;  %s5642_s18 = sphi %s5692_s18, %s7059_s18  }
   0x6   : > { %s5717_s24 = sadd.s32 1, %s5654_s21   ;;  %s97_s25 = sadd.s32 1, %s5650_s20 }
   0x7   : > { %s94_s26 = ssub.s32 %s5654_s21, %s5717_s24  ;;  %p107_p0 = scmp.ne.s32.totalorder %s5650_s20, %s5646_s19 }
   0x8   : > { %p95_p1 = scmp.eq.s32.totalorder %s94_s26, 0  ;;  %p108_p2 = scmp.eq.s32.totalorder %s5713_s22, 1 }
   0x9   : > { %p113_p3 = scmp.ne.s32.totalorder %s5646_s19, %s5642_s18  ;;  %p114_p4 = scmp.eq.s32.totalorder %s4153_s23, 1 }
   0xa   : > { %s5730_s27 = scalar_select %p95_p1, %s5650_s20, %s97_s25  }
   0xb   : > { %p5732_p5 = por %p108_p2, %p107_p0  ;;  %p5736_p6 = por %p114_p4, %p113_p3 }
   0xc   : > { %p4156_p7 = scmp.ge.s32.totalorder %s5654_s21, 1  ;;  %p198_p8 = scmp.lt.s32.totalorder %s5654_s21, 3 }
   0xe   : > { %p199_p9 = pnand %p4156_p7, %p198_p8 }
  0x10   : > { %202 = sbr.rel (%p199_p9) target bundleno = 618 (0x26a), region = 32 }
  0x17   : > { %v4160_v0 = vld [vmem:[%s6943_s1 + $0x4] sm:$0xf]  ;;  %vm519_vm0 = vcmask 1043456   ;;  %vm239_vm1 = vcmask 31744   ;;  %vm242_vm2 = vcmask 25600   ;;  %v6948_v1 = vmov 0.0  }
  0x18   : > { %4772 = vmatprep.subr.msk.mxu1 %vm519_vm0, %v4160_v0  ;;  %240 = vst.msk [vmem:[#allocation2] sm:$0xff] %vm239_vm1, %v6948_v1  ;;  %241 = vst.msk [vmem:[#allocation2 + $0x8] sm:$0xff] %vm239_vm1, %v6948_v1  ;;  %v5759_v2 = vld [vmem:[%s6943_s1 + $0x10] sm:$0xf]  ;;  %p234_p10 = scmp.lt.s32.totalorder %s5713_s22, 1  ;;  %vm249_vm3 = vcmask 24576  }
  0x19   : > { %245 = vst.msk [vmem:[#allocation2 + $0x198] sm:$0xff] %vm239_vm1, %v6948_v1  ;;  %246 = vst.msk [vmem:[#allocation2 + $0x1a0] sm:$0xff] %vm239_vm1, %v6948_v1  ;;  %v5765_v3 = vld [vmem:[%s6943_s1] sm:$0xf]  ;;  %4773 = vmatpush3.msk.msra.mxu1 %vm519_vm0, %v4160_v0  ;;  %4972 = vmatprep.subr.msk.mxu0 %vm519_vm0, %v5759_v2  ;;  %v5773_v4 = vld [vmem:[%s6943_s1 + $0x14] sm:$0xf] }
  0x1a   : > { %243 = vst.msk [vmem:[#allocation2 + $0x10] sm:$0x3] %vm242_vm2, %v6948_v1  ;;  %247 = vst.msk [vmem:[#allocation2 + $0x1a8] sm:$0x3] %vm242_vm2, %v6948_v1  ;;  %4973 = vmatpush3.msk.msra.mxu0 %vm519_vm0, %v5759_v2  ;;  %s235_s13 = scalar_select %p234_p10, %s5713_s22, 1  ;;  %4822 = vmatprep.subr.msk.mxu1 %vm519_vm0, %v5765_v3 }
  0x1b   : > { %266 = vst.msk [vmem:[#allocation2 + $0x29] sm:$0x1] %vm249_vm3, %v6948_v1  ;;  %250 = vst.msk [vmem:[#allocation2 + $0x18] sm:$0x1] %vm249_vm3, %v6948_v1  ;;  %5022 = vmatprep.subr.msk.mxu0 %vm519_vm0, %v5773_v4  ;;  %v5859_v8 = vld [vmem:[%s6943_s1 + $0x8] sm:$0xf] }
  0x1c   : > { %251 = vst.msk [vmem:[#allocation2 + $0x30] sm:$0x1] %vm249_vm3, %v6948_v1  ;;  %252 = vst.msk [vmem:[#allocation2 + $0x48] sm:$0x1] %vm249_vm3, %v6948_v1  ;;  %s4473_s14 = sshll.u32 %s235_s13, 8  ;;  %s6717_s13 = sand.u32 1, %s5646_s19  }
  0x1d   : > { %253 = vst.msk [vmem:[#allocation2 + $0x60] sm:$0x1] %vm249_vm3, %v6948_v1  ;;  %254 = vst.msk [vmem:[#allocation2 + $0x78] sm:$0x1] %vm249_vm3, %v6948_v1  ;;  %s5851_s17 = scalar_lea.vmem %s6942_s0, %s4473_s14  ;;  %v5915_v33 = vld [vmem:[%s6943_s1 + $0x18] sm:$0xf] }
  0x1e   : > { %255 = vst.msk [vmem:[#allocation2 + $0x90] sm:$0x1] %vm249_vm3, %v6948_v1  ;;  %256 = vst.msk [vmem:[#allocation2 + $0xa8] sm:$0x1] %vm249_vm3, %v6948_v1  ;;  %v284_v5 = vld [vmem:[%s5851_s17] sm:$0xff]  ;;  %v285_v6 = vld [vmem:[%s5851_s17 + $0x8] sm:$0xff] }
  0x1f   : > { %257 = vst.msk [vmem:[#allocation2 + $0xc0] sm:$0x1] %vm249_vm3, %v6948_v1  ;;  %258 = vst.msk [vmem:[#allocation2 + $0xd8] sm:$0x1] %vm249_vm3, %v6948_v1  ;;  %v286_v7 = vld [vmem:[%s5851_s17 + $0x10] sm:$0xff]  ;;  %v389_v9 = vld [vmem:[#allocation2 + $0x1] sm:$0xff] }
  0x20   : > { %259 = vst.msk [vmem:[#allocation2 + $0xf0] sm:$0x1] %vm249_vm3, %v6948_v1  ;;  %260 = vst.msk [vmem:[#allocation2 + $0x108] sm:$0x1] %vm249_vm3, %v6948_v1  ;;  %v287_v11 = vld [vmem:[%s5851_s17 + $0x18] sm:$0xff]  ;;  %4774 = vmatprep.mubr.msk.f32.mxu1 %vm239_vm1, %v389_v9  ;;  %v288_v12 = vld [vmem:[%s5851_s17 + $0x20] sm:$0xff] }
  0x21   : > { %261 = vst.msk [vmem:[#allocation2 + $0x120] sm:$0x1] %vm249_vm3, %v6948_v1  ;;  %262 = vst.msk [vmem:[#allocation2 + $0x138] sm:$0x1] %vm249_vm3, %v6948_v1  ;;  %v390_v10 = vld [vmem:[#allocation2 + $0x9] sm:$0xff]  ;;  %v291_v15 = vld [vmem:[%s5851_s17 + $0x38] sm:$0xff] }
  0x22   : > { %263 = vst.msk [vmem:[#allocation2 + $0x150] sm:$0x1] %vm249_vm3, %v6948_v1  ;;  %264 = vst.msk [vmem:[#allocation2 + $0x168] sm:$0x1] %vm249_vm3, %v6948_v1  ;;  %v289_v13 = vld [vmem:[%s5851_s17 + $0x28] sm:$0xff]  ;;  %v290_v14 = vld [vmem:[%s5851_s17 + $0x30] sm:$0xff]  ;;  %4775 = vmatmul.mubr.msk.f32.vlgmr.msra.gmra.mrb[0].mxu1 %vm239_vm1, %v390_v10 }
  0x23   : > { %265 = vst.msk [vmem:[#allocation2 + $0x180] sm:$0x1] %vm249_vm3, %v6948_v1  ;;  %267 = vst.msk [vmem:[#allocation2 + $0x41] sm:$0x1] %vm249_vm3, %v6948_v1  ;;  %v292_v16 = vld [vmem:[%s5851_s17 + $0x40] sm:$0xff]  ;;  %v293_v17 = vld [vmem:[%s5851_s17 + $0x48] sm:$0xff]  ;;  %4823 = vmatpush3.msk.msra.mxu1 %vm519_vm0, %v5765_v3 }
  0x24   : > { %268 = vst.msk [vmem:[#allocation2 + $0x59] sm:$0x1] %vm249_vm3, %v6948_v1  ;;  %269 = vst.msk [vmem:[#allocation2 + $0x71] sm:$0x1] %vm249_vm3, %v6948_v1  ;;  %v294_v18 = vld [vmem:[%s5851_s17 + $0x50] sm:$0xff]  ;;  %v295_v19 = vld [vmem:[%s5851_s17 + $0x58] sm:$0xff]  ;;  %4872 = vmatprep.subr.msk.mxu1 %vm519_vm0, %v5859_v8 }
  0x25   : > { %270 = vst.msk [vmem:[#allocation2 + $0x89] sm:$0x1] %vm249_vm3, %v6948_v1  ;;  %271 = vst.msk [vmem:[#allocation2 + $0xa1] sm:$0x1] %vm249_vm3, %v6948_v1  ;;  %v296_v20 = vld [vmem:[%s5851_s17 + $0x60] sm:$0xff]  ;;  %v297_v21 = vld [vmem:[%s5851_s17 + $0x68] sm:$0xff] }
  0x26   : > { %272 = vst.msk [vmem:[#allocation2 + $0xb9] sm:$0x1] %vm249_vm3, %v6948_v1  ;;  %273 = vst.msk [vmem:[#allocation2 + $0xd1] sm:$0x1] %vm249_vm3, %v6948_v1  ;;  %v298_v22 = vld [vmem:[%s5851_s17 + $0x70] sm:$0xff]  ;;  %v299_v23 = vld [vmem:[%s5851_s17 + $0x78] sm:$0xff] }
  0x27   : > { %274 = vst.msk [vmem:[#allocation2 + $0xe9] sm:$0x1] %vm249_vm3, %v6948_v1  ;;  %275 = vst.msk [vmem:[#allocation2 + $0x101] sm:$0x1] %vm249_vm3, %v6948_v1  ;;  %v300_v24 = vld [vmem:[%s5851_s17 + $0x80] sm:$0xff]  ;;  %v301_v25 = vld [vmem:[%s5851_s17 + $0x88] sm:$0xff] }
  0x28   : > { %276 = vst.msk [vmem:[#allocation2 + $0x119] sm:$0x1] %vm249_vm3, %v6948_v1  ;;  %277 = vst.msk [vmem:[#allocation2 + $0x131] sm:$0x1] %vm249_vm3, %v6948_v1  ;;  %v302_v26 = vld [vmem:[%s5851_s17 + $0x90] sm:$0xff]  ;;  %v303_v27 = vld [vmem:[%s5851_s17 + $0x98] sm:$0xff] }
  0x29   : > { %278 = vst.msk [vmem:[#allocation2 + $0x149] sm:$0x1] %vm249_vm3, %v6948_v1  ;;  %279 = vst.msk [vmem:[#allocation2 + $0x161] sm:$0x1] %vm249_vm3, %v6948_v1  ;;  %v304_v28 = vld [vmem:[%s5851_s17 + $0xa0] sm:$0xff]  ;;  %v305_v29 = vld [vmem:[%s5851_s17 + $0xa8] sm:$0xff] }
  0x2a   : > { %280 = vst.msk [vmem:[#allocation2 + $0x179] sm:$0x1] %vm249_vm3, %v6948_v1  ;;  %281 = vst.msk [vmem:[#allocation2 + $0x191] sm:$0x1] %vm249_vm3, %v6948_v1  ;;  %v306_v38 = vld [vmem:[%s5851_s17 + $0xb0] sm:$0xff]  ;;  %v307_v39 = vld [vmem:[%s5851_s17 + $0xb8] sm:$0xff] }
  0x2b   : > { %319 = vst.msk [vmem:[#allocation2 + $0x19] sm:$0xff] %vm239_vm1, %v284_v5  ;;  %320 = vst.msk [vmem:[#allocation2 + $0x21] sm:$0xff] %vm239_vm1, %v285_v6  ;;  %v308_v40 = vld [vmem:[%s5851_s17 + $0xc0] sm:$0xff]  ;;  %v309_v42 = vld [vmem:[%s5851_s17 + $0xc8] sm:$0xff]  ;;  %s6720_s14 = scalar_lea.vmem [#allocation5], %s6717_s13  ;;  %s6725_s15 = scalar_lea.vmem [#allocation7], %s6717_s13 }
  0x2c   : > { %321 = vst.msk [vmem:[#allocation2 + $0x31] sm:$0xff] %vm239_vm1, %v286_v7  ;;  %322 = vst.msk [vmem:[#allocation2 + $0x39] sm:$0xff] %vm239_vm1, %v287_v11  ;;  %v310_v44 = vld [vmem:[%s5851_s17 + $0xd0] sm:$0xff]  ;;  %v311_v45 = vld [vmem:[%s5851_s17 + $0xd8] sm:$0xff]  ;;  %s4157_s16 = sshll.u32 %s6717_s13, 8  ;;  %s4474_s30 = sshll.u32 %s5713_s22, 12 }
  0x2d   : > { %323 = vst.msk [vmem:[#allocation2 + $0x49] sm:$0xff] %vm239_vm1, %v288_v12  ;;  %324 = vst.msk [vmem:[#allocation2 + $0x51] sm:$0xff] %vm239_vm1, %v289_v13  ;;  %v312_v46 = vld [vmem:[%s5851_s17 + $0xe0] sm:$0xff]  ;;  %v313_v47 = vld [vmem:[%s5851_s17 + $0xe8] sm:$0xff]  ;;  %s6751_s26 = scalar_lea.vmem [#allocation3], %s4157_s16  ;;  %s6824_s9 = scalar_lea.hbm %s6945_s3, %s4474_s30 }
  0x2e   : > { %325 = vst.msk [vmem:[#allocation2 + $0x61] sm:$0xff] %vm239_vm1, %v290_v14  ;;  %326 = vst.msk [vmem:[#allocation2 + $0x69] sm:$0xff] %vm239_vm1, %v291_v15  ;;  %v314_v57 = vld [vmem:[%s5851_s17 + $0xf0] sm:$0xff]  ;;  %v315_v58 = vld [vmem:[%s5851_s17 + $0xf8] sm:$0xff]  ;;  %s4010_s6 = sshll.u32 %s6751_s26, 4  ;;  %s3989_s10 = scalar_lea.sflag [#allocation4], %s6717_s13  ;;  %s6826_s6 = int_to_ptr.vmem [resolvable:$true] %s4010_s6 }
  0x2f   : > { %327 = vst.msk [vmem:[#allocation2 + $0x79] sm:$0xff] %vm239_vm1, %v292_v16  ;;  %328 = vst.msk [vmem:[#allocation2 + $0x81] sm:$0xff] %vm239_vm1, %v293_v17  ;;  %v6044_v63 = vld [vmem:[%s6943_s1 + $0x1c] sm:$0xf]  ;;  %s5532_s11 = scalar_lea.vmem %s6826_s6, 4096  ;;  %s5657_s12 = smov [#allocation3]  }
  0x30   : > { %329 = vst.msk [vmem:[#allocation2 + $0x91] sm:$0xff] %vm239_vm1, %v294_v18  ;;  %330 = vst.msk [vmem:[#allocation2 + $0x99] sm:$0xff] %vm239_vm1, %v295_v19  ;;  %p5533_p11 = scmp.ne.s32.totalorder %s6826_s6, %s5532_s11  ;;  %s5536_s16 = sshll.u32 %s5657_s12, 4  ;;  %s5537_s16 = int_to_ptr.vmem [resolvable:$false] %s5536_s16 }
  0x31   : > { %331 = vst.msk [vmem:[#allocation2 + $0xa9] sm:$0xff] %vm239_vm1, %v296_v20  ;;  %332 = vst.msk [vmem:[#allocation2 + $0xb1] sm:$0xff] %vm239_vm1, %v297_v21  ;;  %s5538_s17 = scalar_lea.vmem %s5537_s16, 8192  ;;  %p5539_p0 = scmp.lt.s32.totalorder %s6826_s6, %s5537_s16 }
  0x32   : > { %333 = vst.msk [vmem:[#allocation2 + $0xc1] sm:$0xff] %vm239_vm1, %v298_v22  ;;  %334 = vst.msk [vmem:[#allocation2 + $0xc9] sm:$0xff] %vm239_vm1, %v299_v23  ;;  %v391_v30 = vld [vmem:[#allocation2 + $0x19] sm:$0xff]  ;;  %v392_v31 = vld [vmem:[#allocation2 + $0x21] sm:$0xff]  ;;  %p5534_p12 = pnand %p5533_p11, %p5732_p5  ;;  %p5540_p1 = scmp.lt.s32.totalorder %s5538_s17, %s5532_s11 }
  0x33   : > { %335 = vst.msk [vmem:[#allocation2 + $0xd9] sm:$0xff] %vm239_vm1, %v300_v24  ;;  %336 = vst.msk [vmem:[#allocation2 + $0xe1] sm:$0xff] %vm239_vm1, %v301_v25  ;;  %v5905_v32 = vld [vmem:[#allocation2 + $0x31] sm:$0xff]  ;;  %4777 = vmatprep.mubr.msk.f32.mxu1 %vm239_vm1, %v391_v30  ;;  %4974 = vmatprep.mubr.msk.f32.mxu0 %vm239_vm1, %v391_v30  ;;  %v5923_v34 = vld [vmem:[#allocation2 + $0x39] sm:$0xff] }
  0x34   : > { %337 = vst.msk [vmem:[#allocation2 + $0xf1] sm:$0xff] %vm239_vm1, %v302_v26  ;;  %338 = vst.msk [vmem:[#allocation2 + $0xf9] sm:$0xff] %vm239_vm1, %v303_v27  ;;  %4778 = vmatmul.mubr.msk.f32.gmra.mrb[2].mxu1 %vm239_vm1, %v392_v31  ;;  %4975 = vmatmul.mubr.msk.f32.vlgmr.msra.gmra.mrb[0].mxu0 %vm239_vm1, %v392_v31  ;;  %v5927_v35 = vld [vmem:[#allocation2 + $0x49] sm:$0xff]  ;;  %v5939_v36 = vld [vmem:[#allocation2 + $0x51] sm:$0xff]  ;;  %p5535_p13 = pneg %p5534_p12  ;;  %p5541_p2 = por %p5540_p1, %p5539_p0 }
  0x35   : > { %339 = vst.msk [vmem:[#allocation2 + $0x109] sm:$0xff] %vm239_vm1, %v304_v28  ;;  %340 = vst.msk [vmem:[#allocation2 + $0x111] sm:$0xff] %vm239_vm1, %v305_v29  ;;  %5023 = vmatpush3.msk.msra.mxu0 %vm519_vm0, %v5773_v4  ;;  %4780 = vmatprep.mubr.msk.f32.mxu1 %vm239_vm1, %v5905_v32  ;;  %v5941_v37 = vld [vmem:[#allocation2 + $0x61] sm:$0xff]  ;;  %v5955_v41 = vld [vmem:[#allocation2 + $0x69] sm:$0xff] }
  0x36   : > { %4977 = vmatprep.mubr.msk.f32.mxu0 %vm239_vm1, %v5905_v32  ;;  %5072 = vmatprep.subr.msk.mxu0 %vm519_vm0, %v5915_v33  ;;  %341 = vst.msk [vmem:[#allocation2 + $0x121] sm:$0xff] %vm239_vm1, %v306_v38  ;;  %342 = vst.msk [vmem:[#allocation2 + $0x129] sm:$0xff] %vm239_vm1, %v307_v39  ;;  %v5960_v43 = vld [vmem:[#allocation2 + $0x79] sm:$0xff]  ;;  %v5978_v48 = vld [vmem:[#allocation2 + $0x81] sm:$0xff]  ;;  %p5542_p3 = pnand %p5541_p2, %p5535_p13 }
  0x37   : > { %343 = vst.msk [vmem:[#allocation2 + $0x139] sm:$0xff] %vm239_vm1, %v308_v40  ;;  %344 = vst.msk [vmem:[#allocation2 + $0x141] sm:$0xff] %vm239_vm1, %v309_v42  ;;  %v5981_v49 = vld [vmem:[#allocation2 + $0x91] sm:$0xff]  ;;  %v5991_v50 = vld [vmem:[#allocation2 + $0x99] sm:$0xff] }
  0x38   : > { %4781 = vmatmul.mubr.msk.f32.gmra.mrb[4].mxu1 %vm239_vm1, %v5923_v34  ;;  %4978 = vmatmul.mubr.msk.f32.gmra.mrb[2].mxu0 %vm239_vm1, %v5923_v34  ;;  %345 = vst.msk [vmem:[#allocation2 + $0x151] sm:$0xff] %vm239_vm1, %v310_v44  ;;  %346 = vst.msk [vmem:[#allocation2 + $0x159] sm:$0xff] %vm239_vm1, %v311_v45  ;;  %v5993_v51 = vld [vmem:[#allocation2 + $0xa9] sm:$0xff]  ;;  %v6003_v52 = vld [vmem:[#allocation2 + $0xb1] sm:$0xff] }
  0x39   : > { %4783 = vmatprep.mubr.msk.f32.mxu1 %vm239_vm1, %v5927_v35  ;;  %4980 = vmatprep.mubr.msk.f32.mxu0 %vm239_vm1, %v5927_v35  ;;  %347 = vst.msk [vmem:[#allocation2 + $0x169] sm:$0xff] %vm239_vm1, %v312_v46  ;;  %348 = vst.msk [vmem:[#allocation2 + $0x171] sm:$0xff] %vm239_vm1, %v313_v47  ;;  %v6005_v53 = vld [vmem:[#allocation2 + $0xc1] sm:$0xff]  ;;  %v6015_v54 = vld [vmem:[#allocation2 + $0xc9] sm:$0xff] }
  0x3a   : > { %6996 = vst [vmem:[#allocation10_spill] sm:$0xff] %v6015_v54  ;;  %v6017_v55 = vld [vmem:[#allocation2 + $0x1a] sm:$0xff]  ;;  %349 = vst.msk [vmem:[#allocation2 + $0x181] sm:$0xff] %vm239_vm1, %v314_v57  ;;  %v6035_v60 = vld [vmem:[#allocation2 + $0x22] sm:$0xff] }
  0x3b   : > { %v6019_v56 = vld [vmem:[#allocation2 + $0xd9] sm:$0xff]  ;;  %350 = vst.msk [vmem:[#allocation2 + $0x189] sm:$0xff] %vm239_vm1, %v315_v58  ;;  %v6033_v59 = vld [vmem:[#allocation2 + $0xe1] sm:$0xff]  ;;  %v6037_v61 = vld [vmem:[#allocation2 + $0xf1] sm:$0xff] }
  0x3c   : > { %4784 = vmatmul.mubr.msk.f32.gmra.mrb[6].mxu1 %vm239_vm1, %v5939_v36  ;;  %4981 = vmatmul.mubr.msk.f32.gmra.mrb[4].mxu0 %vm239_vm1, %v5939_v36  ;;  %6997 = vst [vmem:[#allocation11_spill] sm:$0xff] %v6019_v56  ;;  %6998 = vst [vmem:[#allocation12_spill] sm:$0xff] %v6033_v59  ;;  %v6039_v62 = vld [vmem:[#allocation2 + $0x32] sm:$0xff]  ;;  %v6056_v3 = vld [vmem:[#allocation2 + $0x3a] sm:$0xff] }
  0x3d   : > { %4786 = vmatprep.mubr.msk.f32.mxu1 %vm239_vm1, %v5941_v37  ;;  %4983 = vmatprep.mubr.msk.f32.mxu0 %vm239_vm1, %v5941_v37  ;;  %6999 = vst [vmem:[#allocation13_spill] sm:$0xff] %v6037_v61  ;;  %v6054_v0 = vld [vmem:[#allocation2 + $0xf9] sm:$0xff]  ;;  %v6060_v4 = vld [vmem:[#allocation2 + $0x109] sm:$0xff]  ;;  %v6074_v6 = vld [vmem:[#allocation2 + $0x111] sm:$0xff] }
  0x3e   : > { %7000 = vst [vmem:[#allocation14_spill] sm:$0xff] %v6054_v0  ;;  %7001 = vst [vmem:[#allocation15_spill] sm:$0xff] %v6060_v4  ;;  %v6062_v5 = vld [vmem:[#allocation2 + $0x4a] sm:$0xff]  ;;  %v6076_v7 = vld [vmem:[#allocation2 + $0x52] sm:$0xff] }
  0x3f   : > { %7002 = vst [vmem:[#allocation16_spill] sm:$0xff] %v6074_v6  ;;  %v6078_v9 = vld [vmem:[#allocation2 + $0x121] sm:$0xff]  ;;  %v6090_v11 = vld [vmem:[#allocation2 + $0x129] sm:$0xff]  ;;  %v6094_v13 = vld [vmem:[#allocation2 + $0x139] sm:$0xff] }
  0x40   : > { %4787 = vmatmul.mubr.msk.f32.gmra.mrb[8].mxu1 %vm239_vm1, %v5955_v41  ;;  %4984 = vmatmul.mubr.msk.f32.gmra.mrb[6].mxu0 %vm239_vm1, %v5955_v41  ;;  %7003 = vst [vmem:[#allocation17_spill] sm:$0xff] %v6078_v9  ;;  %v6080_v10 = vld [vmem:[#allocation2 + $0x62] sm:$0xff]  ;;  %7004 = vst [vmem:[#allocation18_spill] sm:$0xff] %v6090_v11  ;;  %v6092_v12 = vld [vmem:[#allocation2 + $0x6a] sm:$0xff] }
  0x41   : > { %4789 = vmatprep.mubr.msk.f32.mxu1 %vm239_vm1, %v5960_v43  ;;  %4986 = vmatprep.mubr.msk.f32.mxu0 %vm239_vm1, %v5960_v43  ;;  %7005 = vst [vmem:[#allocation19_spill] sm:$0xff] %v6094_v13  ;;  %v6096_v14 = vld [vmem:[#allocation2 + $0x7a] sm:$0xff]  ;;  %v6108_v16 = vld [vmem:[#allocation2 + $0x82] sm:$0xff]  ;;  %v6110_v17 = vld [vmem:[#allocation2 + $0x151] sm:$0xff] }
  0x42   : > { %v6106_v15 = vld [vmem:[#allocation2 + $0x141] sm:$0xff]  ;;  %7007 = vst [vmem:[#allocation21_spill] sm:$0xff] %v6110_v17  ;;  %v6112_v18 = vld [vmem:[#allocation2 + $0x92] sm:$0xff]  ;;  %v6126_v21 = vld [vmem:[#allocation2 + $0x169] sm:$0xff] }
  0x43   : > { %7006 = vst [vmem:[#allocation20_spill] sm:$0xff] %v6106_v15  ;;  %v6122_v19 = vld [vmem:[#allocation2 + $0x159] sm:$0xff]  ;;  %7009 = vst [vmem:[#allocation23_spill] sm:$0xff] %v6126_v21  ;;  %v6128_v22 = vld [vmem:[#allocation2 + $0xaa] sm:$0xff] }
  0x44   : > { %4790 = vmatmul.mubr.msk.f32.gmra.mrb[10].mxu1 %vm239_vm1, %v5978_v48  ;;  %4987 = vmatmul.mubr.msk.f32.gmra.mrb[8].mxu0 %vm239_vm1, %v5978_v48  ;;  %7008 = vst [vmem:[#allocation22_spill] sm:$0xff] %v6122_v19  ;;  %v6124_v20 = vld [vmem:[#allocation2 + $0x9a] sm:$0xff]  ;;  %v6138_v23 = vld [vmem:[#allocation2 + $0x171] sm:$0xff]  ;;  %v6142_v26 = vld [vmem:[#allocation2 + $0xc2] sm:$0xff] }
  0x45   : > { %4792 = vmatprep.mubr.msk.f32.mxu1 %vm239_vm1, %v5981_v49  ;;  %4989 = vmatprep.mubr.msk.f32.mxu0 %vm239_vm1, %v5981_v49  ;;  %7010 = vst [vmem:[#allocation24_spill] sm:$0xff] %v6138_v23  ;;  %v6140_v24 = vld [vmem:[#allocation2 + $0xb2] sm:$0xff]  ;;  %v356_v25 = vld [vmem:[#allocation2] sm:$0xff]  ;;  %v357_v27 = vld [vmem:[#allocation2 + $0x8] sm:$0xff] }
  0x46   : > { %v6151_v28 = vld [vmem:[#allocation2 + $0xca] sm:$0xff]  ;;  %v6153_v29 = vld [vmem:[#allocation2 + $0x18] sm:$0xff]  ;;  %v6171_v38 = vld [vmem:[#allocation2 + $0xe2] sm:$0xff] }
  0x47   : > { %7011 = vst [vmem:[#allocation25_spill] sm:$0xff] %v6153_v29  ;;  %v6155_v30 = vld [vmem:[#allocation2 + $0xda] sm:$0xff]  ;;  %v6163_v31 = vld [vmem:[%s6943_s1 + $0xc] sm:$0xf]  ;;  %v6175_v39 = vld [vmem:[#allocation2 + $0x30] sm:$0xff] }
  0x48   : > { %4793 = vmatmul.mubr.msk.f32.gmra.mrb[12].mxu1 %vm239_vm1, %v5991_v50  ;;  %4990 = vmatmul.mubr.msk.f32.gmra.mrb[10].mxu0 %vm239_vm1, %v5991_v50  ;;  %7013 = vst [vmem:[#allocation27_spill] sm:$0xff] %v6175_v39  ;;  %v6177_v40 = vld [vmem:[#allocation2 + $0xf2] sm:$0xff]  ;;  %v6191_v42 = vld [vmem:[#allocation2 + $0xfa] sm:$0xff]  ;;  %v6193_v44 = vld [vmem:[#allocation2 + $0x48] sm:$0xff] }
  0x49   : > { %4795 = vmatprep.mubr.msk.f32.mxu1 %vm239_vm1, %v5993_v51  ;;  %4992 = vmatprep.mubr.msk.f32.mxu0 %vm239_vm1, %v5993_v51  ;;  %7015 = vst [vmem:[#allocation29_spill] sm:$0xff] %v6193_v44  ;;  %v6195_v45 = vld [vmem:[#allocation2 + $0x10a] sm:$0xff]  ;;  %v6207_v47 = vld [vmem:[#allocation2 + $0x112] sm:$0xff]  ;;  %v6209_v57 = vld [vmem:[#allocation2 + $0x60] sm:$0xff] }
  0x4a   : > { %v6205_v46 = vld [vmem:[#allocation2 + $0x50] sm:$0xff]  ;;  %7017 = vst [vmem:[#allocation31_spill] sm:$0xff] %v6209_v57  ;;  %v6211_v58 = vld [vmem:[#allocation2 + $0x122] sm:$0xff]  ;;  %v6225_v1 = vld [vmem:[#allocation2 + $0x78] sm:$0xff] }
  0x4b   : > { %7016 = vst [vmem:[#allocation30_spill] sm:$0xff] %v6205_v46  ;;  %7019 = vst [vmem:[#allocation33_spill] sm:$0xff] %v6225_v1 }
  0x4c   : > { %4796 = vmatmul.mubr.msk.f32.gmra.mrb[14].mxu1 %vm239_vm1, %v6003_v52  ;;  %4993 = vmatmul.mubr.msk.f32.gmra.mrb[12].mxu0 %vm239_vm1, %v6003_v52 }
  0x4d   : > { %4798 = vmatprep.mubr.msk.f32.mxu1 %vm239_vm1, %v6005_v53  ;;  %4995 = vmatprep.mubr.msk.f32.mxu0 %vm239_vm1, %v6005_v53 }
  0x50   : > { %4799 = vmatmul.mubr.msk.f32.gmra.mrb[16].mxu1 %vm239_vm1, %v6015_v54  ;;  %4996 = vmatmul.mubr.msk.f32.gmra.mrb[14].mxu0 %vm239_vm1, %v6015_v54  ;;  %v6299_v54 = vld [vmem:[#allocation2 + $0xe0] sm:$0xff] }
  0x51   : > { %4801 = vmatprep.mubr.msk.f32.mxu1 %vm239_vm1, %v6019_v56  ;;  %5024 = vmatprep.mubr.msk.f32.mxu0 %vm239_vm1, %v6017_v55  ;;  %v6287_v56 = vld [vmem:[#allocation2 + $0x18a] sm:$0xff] }
  0x52   : > { %7026 = vst [vmem:[#allocation40_spill] sm:$0xff] %v6287_v56 }
  0x54   : > { %4802 = vmatmul.mubr.msk.f32.gmra.mrb[18].mxu1 %vm239_vm1, %v6033_v59  ;;  %5025 = vmatmul.mubr.msk.f32.vlgmr.msra.gmra.mrb[0].mxu0 %vm239_vm1, %v6035_v60  ;;  %v6275_v59 = vld [vmem:[#allocation2 + $0x182] sm:$0xff] }
  0x55   : > { %5073 = vmatpush3.msk.msra.mxu0 %vm519_vm0, %v5915_v33  ;;  %4804 = vmatprep.mubr.msk.f32.mxu1 %vm239_vm1, %v6037_v61  ;;  %v6169_v33 = vld [vmem:[#allocation2 + $0x20] sm:$0xff]  ;;  %7025 = vst [vmem:[#allocation39_spill] sm:$0xff] %v6275_v59 }
  0x56   : > { %5027 = vmatprep.mubr.msk.f32.mxu0 %vm239_vm1, %v6039_v62  ;;  %5122 = vmatprep.subr.msk.mxu0 %vm519_vm0, %v6044_v63  ;;  %7012 = vst [vmem:[#allocation26_spill] sm:$0xff] %v6169_v33  ;;  %v6273_v61 = vld [vmem:[#allocation2 + $0xc0] sm:$0xff] }
  0x58   : > { %4805 = vmatmul.mubr.msk.f32.gmra.mrb[20].mxu1 %vm239_vm1, %v6054_v0  ;;  %5028 = vmatmul.mubr.msk.f32.gmra.mrb[2].mxu0 %vm239_vm1, %v6056_v3  ;;  %v6271_v0 = vld [vmem:[#allocation2 + $0x172] sm:$0xff] }
  0x59   : > { %4807 = vmatprep.mubr.msk.f32.mxu1 %vm239_vm1, %v6060_v4  ;;  %5030 = vmatprep.mubr.msk.f32.mxu0 %vm239_vm1, %v6062_v5  ;;  %v6269_v4 = vld [vmem:[#allocation2 + $0xb0] sm:$0xff]  ;;  %7024 = vst [vmem:[#allocation38_spill] sm:$0xff] %v6271_v0 }
  0x5a   : > { %7023 = vst [vmem:[#allocation37_spill] sm:$0xff] %v6269_v4 }
  0x5c   : > { %4808 = vmatmul.mubr.msk.f32.gmra.mrb[22].mxu1 %vm239_vm1, %v6074_v6  ;;  %5031 = vmatmul.mubr.msk.f32.gmra.mrb[4].mxu0 %vm239_vm1, %v6076_v7  ;;  %v6259_v6 = vld [vmem:[#allocation2 + $0x16a] sm:$0xff] }
  0x5d   : > { %4810 = vmatprep.mubr.msk.f32.mxu1 %vm239_vm1, %v6078_v9  ;;  %5033 = vmatprep.mubr.msk.f32.mxu0 %vm239_vm1, %v6080_v10  ;;  %v6257_v9 = vld [vmem:[#allocation2 + $0xa8] sm:$0xff] }
  0x60   : > { %4811 = vmatmul.mubr.msk.f32.gmra.mrb[24].mxu1 %vm239_vm1, %v6090_v11  ;;  %5034 = vmatmul.mubr.msk.f32.gmra.mrb[6].mxu0 %vm239_vm1, %v6092_v12  ;;  %v6255_v11 = vld [vmem:[#allocation2 + $0x15a] sm:$0xff] }
  0x61   : > { %4813 = vmatprep.mubr.msk.f32.mxu1 %vm239_vm1, %v6094_v13  ;;  %5036 = vmatprep.mubr.msk.f32.mxu0 %vm239_vm1, %v6096_v14  ;;  %v6253_v13 = vld [vmem:[#allocation2 + $0x98] sm:$0xff] }
  0x62   : > { %7022 = vst [vmem:[#allocation36_spill] sm:$0xff] %v6253_v13 }
  0x64   : > { %4814 = vmatmul.mubr.msk.f32.gmra.mrb[26].mxu1 %vm239_vm1, %v6106_v15  ;;  %5037 = vmatmul.mubr.msk.f32.gmra.mrb[8].mxu0 %vm239_vm1, %v6108_v16  ;;  %v6243_v15 = vld [vmem:[#allocation2 + $0x152] sm:$0xff] }
  0x65   : > { %4816 = vmatprep.mubr.msk.f32.mxu1 %vm239_vm1, %v6110_v17  ;;  %5039 = vmatprep.mubr.msk.f32.mxu0 %vm239_vm1, %v6112_v18  ;;  %v6241_v17 = vld [vmem:[#allocation2 + $0x90] sm:$0xff] }
  0x66   : > { %7021 = vst [vmem:[#allocation35_spill] sm:$0xff] %v6241_v17 }
  0x68   : > { %4817 = vmatmul.mubr.msk.f32.gmra.mrb[28].mxu1 %vm239_vm1, %v6122_v19  ;;  %5040 = vmatmul.mubr.msk.f32.gmra.mrb[10].mxu0 %vm239_vm1, %v6124_v20  ;;  %v6239_v19 = vld [vmem:[#allocation2 + $0x142] sm:$0xff] }
  0x69   : > { %4819 = vmatprep.mubr.msk.f32.mxu1 %vm239_vm1, %v6126_v21  ;;  %5042 = vmatprep.mubr.msk.f32.mxu0 %vm239_vm1, %v6128_v22  ;;  %v6237_v21 = vld [vmem:[#allocation2 + $0x80] sm:$0xff] }
  0x6a   : > { %7020 = vst [vmem:[#allocation34_spill] sm:$0xff] %v6237_v21 }
  0x6c   : > { %4820 = vmatmul.mubr.msk.f32.gmra.mrb[30].mxu1 %vm239_vm1, %v6138_v23  ;;  %5043 = vmatmul.mubr.msk.f32.gmra.mrb[12].mxu0 %vm239_vm1, %v6140_v24  ;;  %v6227_v23 = vld [vmem:[#allocation2 + $0x13a] sm:$0xff] }
  0x6d   : > { %4824 = vmatprep.mubr.msk.f32.mxu1 %vm239_vm1, %v356_v25  ;;  %5045 = vmatprep.mubr.msk.f32.mxu0 %vm239_vm1, %v6142_v26  ;;  %v6221_v25 = vld [vmem:[#allocation2 + $0x68] sm:$0xff] }
  0x6e   : > { %7018 = vst [vmem:[#allocation32_spill] sm:$0xff] %v6221_v25 }
  0x70   : > { %4825 = vmatmul.mubr.msk.f32.vlgmr.msra.gmra.mrb[0].mxu1 %vm239_vm1, %v357_v27  ;;  %5046 = vmatmul.mubr.msk.f32.gmra.mrb[14].mxu0 %vm239_vm1, %v6151_v28  ;;  %v6223_v27 = vld [vmem:[#allocation2 + $0x12a] sm:$0xff] }
  0x71   : > { %4827 = vmatprep.mubr.msk.f32.mxu1 %vm239_vm1, %v6153_v29  ;;  %5048 = vmatprep.mubr.msk.f32.mxu0 %vm239_vm1, %v6155_v30  ;;  %v6289_v29 = vld [vmem:[#allocation2 + $0xd8] sm:$0xff] }
  0x72   : > { %4873 = vmatpush3.msk.msra.mxu1 %vm519_vm0, %v5859_v8  ;;  %v6189_v8 = vld [vmem:[#allocation2 + $0x38] sm:$0xff] }
  0x73   : > { %4922 = vmatprep.subr.msk.mxu1 %vm519_vm0, %v6163_v31  ;;  %7014 = vst [vmem:[#allocation28_spill] sm:$0xff] %v6189_v8 }
  0x74   : > { %4828 = vmatmul.mubr.msk.f32.gmra.mrb[2].mxu1 %vm239_vm1, %v6169_v33  ;;  %5049 = vmatmul.mubr.msk.f32.gmra.mrb[16].mxu0 %vm239_vm1, %v6171_v38  ;;  %v6285_v33 = vld [vmem:[#allocation2 + $0xc8] sm:$0xff] }
  0x75   : > { %4830 = vmatprep.mubr.msk.f32.mxu1 %vm239_vm1, %v6175_v39  ;;  %5051 = vmatprep.mubr.msk.f32.mxu0 %vm239_vm1, %v6177_v40 }
  0x78   : > { %4831 = vmatmul.mubr.msk.f32.gmra.mrb[4].mxu1 %vm239_vm1, %v6189_v8  ;;  %5052 = vmatmul.mubr.msk.f32.gmra.mrb[18].mxu0 %vm239_vm1, %v6191_v42 }
  0x79   : > { %4833 = vmatprep.mubr.msk.f32.mxu1 %vm239_vm1, %v6193_v44  ;;  %5054 = vmatprep.mubr.msk.f32.mxu0 %vm239_vm1, %v6195_v45 }
  0x7c   : > { %4834 = vmatmul.mubr.msk.f32.gmra.mrb[6].mxu1 %vm239_vm1, %v6205_v46  ;;  %5055 = vmatmul.mubr.msk.f32.gmra.mrb[20].mxu0 %vm239_vm1, %v6207_v47 }
  0x7d   : > { %4836 = vmatprep.mubr.msk.f32.mxu1 %vm239_vm1, %v6209_v57  ;;  %5057 = vmatprep.mubr.msk.f32.mxu0 %vm239_vm1, %v6211_v58 }
  0x80   : > { %4837 = vmatmul.mubr.msk.f32.gmra.mrb[8].mxu1 %vm239_vm1, %v6221_v25  ;;  %5058 = vmatmul.mubr.msk.f32.gmra.mrb[22].mxu0 %vm239_vm1, %v6223_v27 }
  0x81   : > { %4839 = vmatprep.mubr.msk.f32.mxu1 %vm239_vm1, %v6225_v1  ;;  %5060 = vmatprep.mubr.msk.f32.mxu0 %vm239_vm1, %v6227_v23 }
  0x84   : > { %4840 = vmatmul.mubr.msk.f32.gmra.mrb[10].mxu1 %vm239_vm1, %v6237_v21  ;;  %5061 = vmatmul.mubr.msk.f32.gmra.mrb[24].mxu0 %vm239_vm1, %v6239_v19 }
  0x85   : > { %4842 = vmatprep.mubr.msk.f32.mxu1 %vm239_vm1, %v6241_v17  ;;  %5063 = vmatprep.mubr.msk.f32.mxu0 %vm239_vm1, %v6243_v15 }
  0x88   : > { %4843 = vmatmul.mubr.msk.f32.gmra.mrb[12].mxu1 %vm239_vm1, %v6253_v13  ;;  %5064 = vmatmul.mubr.msk.f32.gmra.mrb[26].mxu0 %vm239_vm1, %v6255_v11 }
  0x89   : > { %4845 = vmatprep.mubr.msk.f32.mxu1 %vm239_vm1, %v6257_v9  ;;  %5066 = vmatprep.mubr.msk.f32.mxu0 %vm239_vm1, %v6259_v6 }
  0x8c   : > { %4846 = vmatmul.mubr.msk.f32.gmra.mrb[14].mxu1 %vm239_vm1, %v6269_v4  ;;  %5067 = vmatmul.mubr.msk.f32.gmra.mrb[28].mxu0 %vm239_vm1, %v6271_v0  ;;  %v6306_v0 = vld [vmem:[%s6943_s1 + $0x20] sm:$0xf] }
  0x8d   : > { %4848 = vmatprep.mubr.msk.f32.mxu1 %vm239_vm1, %v6273_v61  ;;  %5069 = vmatprep.mubr.msk.f32.mxu0 %vm239_vm1, %v6275_v59  ;;  %v6301_v59 = vld [vmem:[#allocation2 + $0xf0] sm:$0xff] }
  0x90   : > { %4849 = vmatmul.mubr.msk.f32.gmra.mrb[16].mxu1 %vm239_vm1, %v6285_v33  ;;  %5070 = vmatmul.mubr.msk.f32.gmra.mrb[30].mxu0 %vm239_vm1, %v6287_v56  ;;  %v6316_v56 = vld [vmem:[#allocation2 + $0xf8] sm:$0xff] }
  0x91   : > { %4851 = vmatprep.mubr.msk.f32.mxu1 %vm239_vm1, %v6289_v29  ;;  %5074 = vmatprep.mubr.msk.f32.mxu0 %vm239_vm1, %v6175_v39  ;;  %v6320_v39 = vld [vmem:[#allocation2 + $0x108] sm:$0xff] }
  0x94   : > { %4852 = vmatmul.mubr.msk.f32.gmra.mrb[18].mxu1 %vm239_vm1, %v6299_v54  ;;  %5075 = vmatmul.mubr.msk.f32.vlgmr.msra.gmra.mrb[0].mxu0 %vm239_vm1, %v6189_v8  ;;  %v6346_v8 = vld [vmem:[#allocation2 + $0x138] sm:$0xff] }
  0x95   : > { %5123 = vmatpush3.msk.msra.mxu0 %vm519_vm0, %v6044_v63  ;;  %4854 = vmatprep.mubr.msk.f32.mxu1 %vm239_vm1, %v6301_v59  ;;  %v6332_v63 = vld [vmem:[#allocation2 + $0x110] sm:$0xff] }
  0x96   : > { %5077 = vmatprep.mubr.msk.f32.mxu0 %vm239_vm1, %v6193_v44  ;;  %5172 = vmatprep.subr.msk.mxu0 %vm519_vm0, %v6306_v0  ;;  %v6334_v44 = vld [vmem:[#allocation2 + $0x120] sm:$0xff] }
  0x98   : > { %4855 = vmatmul.mubr.msk.f32.gmra.mrb[20].mxu1 %vm239_vm1, %v6316_v56  ;;  %5078 = vmatmul.mubr.msk.f32.gmra.mrb[2].mxu0 %vm239_vm1, %v6205_v46  ;;  %v6344_v46 = vld [vmem:[#allocation2 + $0x128] sm:$0xff] }
  0x99   : > { %4857 = vmatprep.mubr.msk.f32.mxu1 %vm239_vm1, %v6320_v39  ;;  %5080 = vmatprep.mubr.msk.f32.mxu0 %vm239_vm1, %v6209_v57  ;;  %v6358_v57 = vld [vmem:[#allocation2 + $0x150] sm:$0xff] }
  0x9c   : > { %4858 = vmatmul.mubr.msk.f32.gmra.mrb[22].mxu1 %vm239_vm1, %v6332_v63  ;;  %5081 = vmatmul.mubr.msk.f32.gmra.mrb[4].mxu0 %vm239_vm1, %v6221_v25  ;;  %v6356_v25 = vld [vmem:[#allocation2 + $0x140] sm:$0xff] }
  0x9d   : > { %4860 = vmatprep.mubr.msk.f32.mxu1 %vm239_vm1, %v6334_v44  ;;  %5083 = vmatprep.mubr.msk.f32.mxu0 %vm239_vm1, %v6225_v1  ;;  %v6370_v1 = vld [vmem:[#allocation2 + $0x168] sm:$0xff] }
  0xa0   : > { %4861 = vmatmul.mubr.msk.f32.gmra.mrb[24].mxu1 %vm239_vm1, %v6344_v46  ;;  %5084 = vmatmul.mubr.msk.f32.gmra.mrb[6].mxu0 %vm239_vm1, %v6237_v21  ;;  %v6368_v21 = vld [vmem:[#allocation2 + $0x158] sm:$0xff] }
  0xa1   : > { %4863 = vmatprep.mubr.msk.f32.mxu1 %vm239_vm1, %v6346_v8  ;;  %5086 = vmatprep.mubr.msk.f32.mxu0 %vm239_vm1, %v6241_v17  ;;  %v1072_v17 = vld [vmem:[#allocation2 + $0x2] sm:$0xff] }
  0xa4   : > { %4864 = vmatmul.mubr.msk.f32.gmra.mrb[26].mxu1 %vm239_vm1, %v6356_v25  ;;  %5087 = vmatmul.mubr.msk.f32.gmra.mrb[8].mxu0 %vm239_vm1, %v6253_v13  ;;  %v6380_v13 = vld [vmem:[#allocation2 + $0x170] sm:$0xff] }
  0xa5   : > { %4866 = vmatprep.mubr.msk.f32.mxu1 %vm239_vm1, %v6358_v57  ;;  %5089 = vmatprep.mubr.msk.f32.mxu0 %vm239_vm1, %v6257_v9 }
  0xa8   : > { %4867 = vmatmul.mubr.msk.f32.gmra.mrb[28].mxu1 %vm239_vm1, %v6368_v21  ;;  %5090 = vmatmul.mubr.msk.f32.gmra.mrb[10].mxu0 %vm239_vm1, %v6269_v4  ;;  %v1073_v4 = vld [vmem:[#allocation2 + $0xa] sm:$0xff] }
  0xa9   : > { %4869 = vmatprep.mubr.msk.f32.mxu1 %vm239_vm1, %v6370_v1  ;;  %5092 = vmatprep.mubr.msk.f32.mxu0 %vm239_vm1, %v6273_v61 }
  0xac   : > { %4870 = vmatmul.mubr.msk.f32.gmra.mrb[30].mxu1 %vm239_vm1, %v6380_v13  ;;  %5093 = vmatmul.mubr.msk.f32.gmra.mrb[12].mxu0 %vm239_vm1, %v6285_v33 }
  0xad   : > { %4874 = vmatprep.mubr.msk.f32.mxu1 %vm239_vm1, %v1072_v17  ;;  %5095 = vmatprep.mubr.msk.f32.mxu0 %vm239_vm1, %v6289_v29  ;;  %v2666_v17 = vld [vmem:[#allocation2 + $0x1a0] sm:$0xff] }
  0xb0   : > { %4875 = vmatmul.mubr.msk.f32.vlgmr.msra.gmra.mrb[0].mxu1 %vm239_vm1, %v1073_v4  ;;  %5096 = vmatmul.mubr.msk.f32.gmra.mrb[14].mxu0 %vm239_vm1, %v6299_v54  ;;  %v2665_v4 = vld [vmem:[#allocation2 + $0x198] sm:$0xff] }
  0xb1   : > { %4877 = vmatprep.mubr.msk.f32.mxu1 %vm239_vm1, %v6017_v55  ;;  %5098 = vmatprep.mubr.msk.f32.mxu0 %vm239_vm1, %v6301_v59  ;;  %v6440_v55 = vld [vmem:[#allocation2 + $0x180] sm:$0xff] }
  0xb2   : > { %4923 = vmatpush3.msk.msra.mxu1 %vm519_vm0, %v6163_v31  ;;  %v7041_v31 = vld [vmem:[#allocation31_spill] sm:$0xff] }
  0xb3   : > { %5222 = vmatprep.subr.msk.mxu1 %vm519_vm0, %v5759_v2 }
  0xb4   : > { %4878 = vmatmul.mubr.msk.f32.gmra.mrb[2].mxu1 %vm239_vm1, %v6035_v60  ;;  %5099 = vmatmul.mubr.msk.f32.gmra.mrb[16].mxu0 %vm239_vm1, %v6316_v56  ;;  %v6450_v60 = vld [vmem:[#allocation2 + $0x188] sm:$0xff] }
  0xb5   : > { %4880 = vmatprep.mubr.msk.f32.mxu1 %vm239_vm1, %v6039_v62  ;;  %5101 = vmatprep.mubr.msk.f32.mxu0 %vm239_vm1, %v6320_v39 }
  0xb8   : > { %4881 = vmatmul.mubr.msk.f32.gmra.mrb[4].mxu1 %vm239_vm1, %v6056_v3  ;;  %5102 = vmatmul.mubr.msk.f32.gmra.mrb[18].mxu0 %vm239_vm1, %v6332_v63 }
  0xb9   : > { %4883 = vmatprep.mubr.msk.f32.mxu1 %vm239_vm1, %v6062_v5  ;;  %5104 = vmatprep.mubr.msk.f32.mxu0 %vm239_vm1, %v6334_v44 }
  0xbc   : > { %4884 = vmatmul.mubr.msk.f32.gmra.mrb[6].mxu1 %vm239_vm1, %v6076_v7  ;;  %5105 = vmatmul.mubr.msk.f32.gmra.mrb[20].mxu0 %vm239_vm1, %v6344_v46 }
  0xbd   : > { %4886 = vmatprep.mubr.msk.f32.mxu1 %vm239_vm1, %v6080_v10  ;;  %5107 = vmatprep.mubr.msk.f32.mxu0 %vm239_vm1, %v6346_v8 }
  0xc0   : > { %4887 = vmatmul.mubr.msk.f32.gmra.mrb[8].mxu1 %vm239_vm1, %v6092_v12  ;;  %5108 = vmatmul.mubr.msk.f32.gmra.mrb[22].mxu0 %vm239_vm1, %v6356_v25 }
  0xc1   : > { %4889 = vmatprep.mubr.msk.f32.mxu1 %vm239_vm1, %v6096_v14  ;;  %5110 = vmatprep.mubr.msk.f32.mxu0 %vm239_vm1, %v6358_v57 }
  0xc4   : > { %4890 = vmatmul.mubr.msk.f32.gmra.mrb[10].mxu1 %vm239_vm1, %v6108_v16  ;;  %5111 = vmatmul.mubr.msk.f32.gmra.mrb[24].mxu0 %vm239_vm1, %v6368_v21 }
  0xc5   : > { %4892 = vmatprep.mubr.msk.f32.mxu1 %vm239_vm1, %v6112_v18  ;;  %5113 = vmatprep.mubr.msk.f32.mxu0 %vm239_vm1, %v6370_v1 }
  0xc8   : > { %4893 = vmatmul.mubr.msk.f32.gmra.mrb[12].mxu1 %vm239_vm1, %v6124_v20  ;;  %5114 = vmatmul.mubr.msk.f32.gmra.mrb[26].mxu0 %vm239_vm1, %v6380_v13 }
  0xc9   : > { %4895 = vmatprep.mubr.msk.f32.mxu1 %vm239_vm1, %v6128_v22  ;;  %5116 = vmatprep.mubr.msk.f32.mxu0 %vm239_vm1, %v6440_v55 }
  0xcc   : > { %4896 = vmatmul.mubr.msk.f32.gmra.mrb[14].mxu1 %vm239_vm1, %v6140_v24  ;;  %5117 = vmatmul.mubr.msk.f32.gmra.mrb[28].mxu0 %vm239_vm1, %v6450_v60 }
  0xcd   : > { %4898 = vmatprep.mubr.msk.f32.mxu1 %vm239_vm1, %v6142_v26  ;;  %5119 = vmatprep.mubr.msk.f32.mxu0 %vm239_vm1, %v2665_v4  ;;  %v7043_v4 = vld [vmem:[#allocation32_spill] sm:$0xff] }
  0xd0   : > { %4899 = vmatmul.mubr.msk.f32.gmra.mrb[16].mxu1 %vm239_vm1, %v6151_v28  ;;  %5120 = vmatmul.mubr.msk.f32.gmra.mrb[30].mxu0 %vm239_vm1, %v2666_v17  ;;  %v7044_v17 = vld [vmem:[#allocation18_spill] sm:$0xff] }
  0xd1   : > { %4901 = vmatprep.mubr.msk.f32.mxu1 %vm239_vm1, %v6155_v30  ;;  %5124 = vmatprep.mubr.msk.f32.mxu0 %vm239_vm1, %v5905_v32  ;;  %v7027_v32 = vld [vmem:[#allocation38_spill] sm:$0xff] }
  0xd4   : > { %4902 = vmatmul.mubr.msk.f32.gmra.mrb[18].mxu1 %vm239_vm1, %v6171_v38  ;;  %5125 = vmatmul.mubr.msk.f32.vlgmr.msra.gmra.mrb[0].mxu0 %vm239_vm1, %v5923_v34  ;;  %v7028_v34 = vld [vmem:[#allocation10_spill] sm:$0xff] }
  0xd5   : > { %5173 = vmatpush3.msk.msra.mxu0 %vm519_vm0, %v6306_v0  ;;  %4904 = vmatprep.mubr.msk.f32.mxu1 %vm239_vm1, %v6177_v40  ;;  %v7040_v0 = vld [vmem:[#allocation16_spill] sm:$0xff] }
  0xd6   : > { %5127 = vmatprep.mubr.msk.f32.mxu0 %vm239_vm1, %v5927_v35  ;;  %v7029_v35 = vld [vmem:[#allocation25_spill] sm:$0xff] }
  0xd8   : > { %4905 = vmatmul.mubr.msk.f32.gmra.mrb[20].mxu1 %vm239_vm1, %v6191_v42  ;;  %5128 = vmatmul.mubr.msk.f32.gmra.mrb[2].mxu0 %vm239_vm1, %v5939_v36  ;;  %v7030_v36 = vld [vmem:[#allocation11_spill] sm:$0xff] }
  0xd9   : > { %4907 = vmatprep.mubr.msk.f32.mxu1 %vm239_vm1, %v6195_v45  ;;  %5130 = vmatprep.mubr.msk.f32.mxu0 %vm239_vm1, %v5941_v37  ;;  %v7031_v37 = vld [vmem:[#allocation26_spill] sm:$0xff] }
  0xdc   : > { %4908 = vmatmul.mubr.msk.f32.gmra.mrb[22].mxu1 %vm239_vm1, %v6207_v47  ;;  %5131 = vmatmul.mubr.msk.f32.gmra.mrb[4].mxu0 %vm239_vm1, %v5955_v41  ;;  %v7032_v41 = vld [vmem:[#allocation12_spill] sm:$0xff] }
  0xdd   : > { %4910 = vmatprep.mubr.msk.f32.mxu1 %vm239_vm1, %v6211_v58  ;;  %5133 = vmatprep.mubr.msk.f32.mxu0 %vm239_vm1, %v5960_v43  ;;  %v7033_v43 = vld [vmem:[#allocation27_spill] sm:$0xff] }
  0xe0   : > { %4911 = vmatmul.mubr.msk.f32.gmra.mrb[24].mxu1 %vm239_vm1, %v6223_v27  ;;  %5134 = vmatmul.mubr.msk.f32.gmra.mrb[6].mxu0 %vm239_vm1, %v5978_v48  ;;  %v7034_v48 = vld [vmem:[#allocation13_spill] sm:$0xff] }
  0xe1   : > { %4913 = vmatprep.mubr.msk.f32.mxu1 %vm239_vm1, %v6227_v23  ;;  %5136 = vmatprep.mubr.msk.f32.mxu0 %vm239_vm1, %v5981_v49  ;;  %v7035_v49 = vld [vmem:[#allocation28_spill] sm:$0xff] }
  0xe4   : > { %4914 = vmatmul.mubr.msk.f32.gmra.mrb[26].mxu1 %vm239_vm1, %v6239_v19  ;;  %5137 = vmatmul.mubr.msk.f32.gmra.mrb[8].mxu0 %vm239_vm1, %v5991_v50  ;;  %v7036_v50 = vld [vmem:[#allocation14_spill] sm:$0xff] }
  0xe5   : > { %4916 = vmatprep.mubr.msk.f32.mxu1 %vm239_vm1, %v6243_v15  ;;  %5139 = vmatprep.mubr.msk.f32.mxu0 %vm239_vm1, %v5993_v51  ;;  %v7037_v51 = vld [vmem:[#allocation29_spill] sm:$0xff] }
  0xe8   : > { %4917 = vmatmul.mubr.msk.f32.gmra.mrb[28].mxu1 %vm239_vm1, %v6255_v11  ;;  %5140 = vmatmul.mubr.msk.f32.gmra.mrb[10].mxu0 %vm239_vm1, %v6003_v52  ;;  %v7038_v52 = vld [vmem:[#allocation15_spill] sm:$0xff] }
  0xe9   : > { %4919 = vmatprep.mubr.msk.f32.mxu1 %vm239_vm1, %v6259_v6  ;;  %5142 = vmatprep.mubr.msk.f32.mxu0 %vm239_vm1, %v6005_v53  ;;  %v7039_v53 = vld [vmem:[#allocation30_spill] sm:$0xff] }
  0xec   : > { %4920 = vmatmul.mubr.msk.f32.gmra.mrb[30].mxu1 %vm239_vm1, %v7027_v32  ;;  %5143 = vmatmul.mubr.msk.f32.gmra.mrb[12].mxu0 %vm239_vm1, %v7028_v34  ;;  %v7045_v34 = vld [vmem:[#allocation33_spill] sm:$0xff] }
  0xed   : > { %4924 = vmatprep.mubr.msk.f32.mxu1 %vm239_vm1, %v7029_v35  ;;  %5145 = vmatprep.mubr.msk.f32.mxu0 %vm239_vm1, %v7030_v36  ;;  %v7046_v35 = vld [vmem:[#allocation19_spill] sm:$0xff]  ;;  %v7047_v36 = vld [vmem:[#allocation34_spill] sm:$0xff] }
  0xf0   : > { %4925 = vmatmul.mubr.msk.f32.vlgmr.msra.gmra.mrb[0].mxu1 %vm239_vm1, %v7031_v37  ;;  %5146 = vmatmul.mubr.msk.f32.gmra.mrb[14].mxu0 %vm239_vm1, %v7032_v41  ;;  %v7048_v37 = vld [vmem:[#allocation20_spill] sm:$0xff]  ;;  %v7049_v41 = vld [vmem:[#allocation35_spill] sm:$0xff] }
  0xf1   : > { %4927 = vmatprep.mubr.msk.f32.mxu1 %vm239_vm1, %v7033_v43  ;;  %5148 = vmatprep.mubr.msk.f32.mxu0 %vm239_vm1, %v7034_v48  ;;  %v7050_v43 = vld [vmem:[#allocation21_spill] sm:$0xff] }
  0xf2   : > { %5223 = vmatpush3.msk.msra.mxu1 %vm519_vm0, %v5759_v2  ;;  %v7042_v2 = vld [vmem:[#allocation17_spill] sm:$0xff] }
  0xf4   : > { %4928 = vmatmul.mubr.msk.f32.gmra.mrb[2].mxu1 %vm239_vm1, %v7035_v49  ;;  %5149 = vmatmul.mubr.msk.f32.gmra.mrb[16].mxu0 %vm239_vm1, %v7036_v50  ;;  %v7051_v49 = vld [vmem:[#allocation36_spill] sm:$0xff] }
  0xf5   : > { %4930 = vmatprep.mubr.msk.f32.mxu1 %vm239_vm1, %v7037_v51  ;;  %5151 = vmatprep.mubr.msk.f32.mxu0 %vm239_vm1, %v7038_v52  ;;  %v7052_v51 = vld [vmem:[#allocation22_spill] sm:$0xff] }
  0xf8   : > { %4931 = vmatmul.mubr.msk.f32.gmra.mrb[4].mxu1 %vm239_vm1, %v7039_v53  ;;  %5152 = vmatmul.mubr.msk.f32.gmra.mrb[18].mxu0 %vm239_vm1, %v7040_v0  ;;  %v7053_v53 = vld [vmem:[#allocation23_spill] sm:$0xff] }
  0xf9   : > { %4933 = vmatprep.mubr.msk.f32.mxu1 %vm239_vm1, %v7041_v31  ;;  %5154 = vmatprep.mubr.msk.f32.mxu0 %vm239_vm1, %v7042_v2  ;;  %v6574_v31 = vld [vmem:[#allocation2 + $0x181] sm:$0xff] }
  0xfc   : > { %4934 = vmatmul.mubr.msk.f32.gmra.mrb[6].mxu1 %vm239_vm1, %v7043_v4  ;;  %5155 = vmatmul.mubr.msk.f32.gmra.mrb[20].mxu0 %vm239_vm1, %v7044_v17  ;;  %v7054_v4 = vld [vmem:[#allocation37_spill] sm:$0xff] }
  0xfd   : > { %4936 = vmatprep.mubr.msk.f32.mxu1 %vm239_vm1, %v7045_v34  ;;  %5157 = vmatprep.mubr.msk.f32.mxu0 %vm239_vm1, %v7046_v35  ;;  %v7055_v34 = vld [vmem:[#allocation24_spill] sm:$0xff] }
 0x100   : > { %4937 = vmatmul.mubr.msk.f32.gmra.mrb[8].mxu1 %vm239_vm1, %v7047_v36  ;;  %5158 = vmatmul.mubr.msk.f32.gmra.mrb[22].mxu0 %vm239_vm1, %v7048_v37  ;;  %v6584_v36 = vld [vmem:[#allocation2 + $0x189] sm:$0xff] }
 0x101   : > { %4939 = vmatprep.mubr.msk.f32.mxu1 %vm239_vm1, %v7049_v41  ;;  %5160 = vmatprep.mubr.msk.f32.mxu0 %vm239_vm1, %v7050_v43  ;;  %v3056_v41 = vld [vmem:[#allocation2 + $0x1a1] sm:$0xff] }
 0x104   : > { %4940 = vmatmul.mubr.msk.f32.gmra.mrb[10].mxu1 %vm239_vm1, %v7051_v49  ;;  %5161 = vmatmul.mubr.msk.f32.gmra.mrb[24].mxu0 %vm239_vm1, %v7052_v51 }
 0x105   : > { %4942 = vmatprep.mubr.msk.f32.mxu1 %vm239_vm1, %v6257_v9  ;;  %5163 = vmatprep.mubr.msk.f32.mxu0 %vm239_vm1, %v7053_v53  ;;  %v3055_v9 = vld [vmem:[#allocation2 + $0x199] sm:$0xff] }
 0x108   : > { %4943 = vmatmul.mubr.msk.f32.gmra.mrb[12].mxu1 %vm239_vm1, %v7054_v4  ;;  %5164 = vmatmul.mubr.msk.f32.gmra.mrb[26].mxu0 %vm239_vm1, %v7055_v34 }
 0x109   : > { %4945 = vmatprep.mubr.msk.f32.mxu1 %vm239_vm1, %v6273_v61  ;;  %5166 = vmatprep.mubr.msk.f32.mxu0 %vm239_vm1, %v6574_v31  ;;  %v7057_v61 = vld [vmem:[#allocation40_spill] sm:$0xff] }
 0x10c   : > { %4946 = vmatmul.mubr.msk.f32.gmra.mrb[14].mxu1 %vm239_vm1, %v6285_v33  ;;  %5167 = vmatmul.mubr.msk.f32.gmra.mrb[28].mxu0 %vm239_vm1, %v6584_v36 }
 0x10d   : > { %4948 = vmatprep.mubr.msk.f32.mxu1 %vm239_vm1, %v6289_v29  ;;  %5169 = vmatprep.mubr.msk.f32.mxu0 %vm239_vm1, %v3055_v9 }
 0x110   : > { %4949 = vmatmul.mubr.msk.f32.gmra.mrb[16].mxu1 %vm239_vm1, %v6299_v54  ;;  %5170 = vmatmul.mubr.msk.f32.gmra.mrb[30].mxu0 %vm239_vm1, %v3056_v41  ;;  %v1868_v54 = vld [vmem:[#allocation2 + $0xd9] sm:$0xff] }
 0x111   : > { %4951 = vmatprep.mubr.msk.f32.mxu1 %vm239_vm1, %v6301_v59  ;;  %5174 = vmatprep.mubr.msk.f32.mxu0 %vm239_vm1, %v6039_v62  ;;  %v3445_v59 = vld [vmem:[#allocation2 + $0x19a] sm:$0xff]  ;;  %v3446_v62 = vld [vmem:[#allocation2 + $0x1a2] sm:$0xff] }
 0x114   : > { %4952 = vmatmul.mubr.msk.f32.gmra.mrb[18].mxu1 %vm239_vm1, %v6316_v56  ;;  %5175 = vmatmul.mubr.msk.f32.vlgmr.msra.gmra.mrb[0].mxu0 %vm239_vm1, %v6056_v3  ;;  %v7056_v56 = vld [vmem:[#allocation39_spill] sm:$0xff]  ;;  %v7058_v3 = vmov 0.0  }
 0x115   : > { %4954 = vmatprep.mubr.msk.f32.mxu1 %vm239_vm1, %v6320_v39  ;;  %5177 = vmatprep.mubr.msk.f32.mxu0 %vm239_vm1, %v6062_v5  ;;  %352 = vst [vmem:[%s6720_s14] sm:$0x1] %v7058_v3  ;;  %353 = vst [vmem:[%s6725_s15] sm:$0x1] %v7058_v3 }
 0x118   : > { %4955 = vmatmul.mubr.msk.f32.gmra.mrb[20].mxu1 %vm239_vm1, %v6332_v63  ;;  %5178 = vmatmul.mubr.msk.f32.gmra.mrb[2].mxu0 %vm239_vm1, %v6076_v7 }
 0x119   : > { %4957 = vmatprep.mubr.msk.f32.mxu1 %vm239_vm1, %v6334_v44  ;;  %5180 = vmatprep.mubr.msk.f32.mxu0 %vm239_vm1, %v6080_v10 }
 0x11c   : > { %4958 = vmatmul.mubr.msk.f32.gmra.mrb[22].mxu1 %vm239_vm1, %v6344_v46  ;;  %5181 = vmatmul.mubr.msk.f32.gmra.mrb[4].mxu0 %vm239_vm1, %v6092_v12 }
 0x11d   : > { %4960 = vmatprep.mubr.msk.f32.mxu1 %vm239_vm1, %v6346_v8  ;;  %5183 = vmatprep.mubr.msk.f32.mxu0 %vm239_vm1, %v6096_v14 }
 0x120   : > { %4961 = vmatmul.mubr.msk.f32.gmra.mrb[24].mxu1 %vm239_vm1, %v6356_v25  ;;  %5184 = vmatmul.mubr.msk.f32.gmra.mrb[6].mxu0 %vm239_vm1, %v6108_v16 }
 0x121   : > { %4963 = vmatprep.mubr.msk.f32.mxu1 %vm239_vm1, %v6358_v57  ;;  %5186 = vmatprep.mubr.msk.f32.mxu0 %vm239_vm1, %v6112_v18 }
 0x124   : > { %4964 = vmatmul.mubr.msk.f32.gmra.mrb[26].mxu1 %vm239_vm1, %v6368_v21  ;;  %5187 = vmatmul.mubr.msk.f32.gmra.mrb[8].mxu0 %vm239_vm1, %v6124_v20 }
 0x125   : > { %4966 = vmatprep.mubr.msk.f32.mxu1 %vm239_vm1, %v6370_v1  ;;  %5189 = vmatprep.mubr.msk.f32.mxu0 %vm239_vm1, %v6128_v22  ;;  %v1869_v1 = vld [vmem:[#allocation2 + $0xe1] sm:$0xff] }
 0x128   : > { %4967 = vmatmul.mubr.msk.f32.gmra.mrb[28].mxu1 %vm239_vm1, %v6380_v13  ;;  %5190 = vmatmul.mubr.msk.f32.gmra.mrb[10].mxu0 %vm239_vm1, %v6140_v24  ;;  %v6747_v24 = vld [vmem:[%s6944_s2] ss:$0 sm:$0xff] }
 0x129   : > { %4969 = vmatprep.mubr.msk.f32.mxu1 %vm239_vm1, %v6440_v55  ;;  %5192 = vmatprep.mubr.msk.f32.mxu0 %vm239_vm1, %v6142_v26 }
 0x12c   : > { %4970 = vmatmul.mubr.msk.f32.gmra.mrb[30].mxu1 %vm239_vm1, %v6450_v60  ;;  %5193 = vmatmul.mubr.msk.f32.gmra.mrb[12].mxu0 %vm239_vm1, %v6151_v28 }
 0x12d   : > { %4998 = vmatprep.mubr.msk.f32.mxu1 %vm239_vm1, %v1868_v54  ;;  %5195 = vmatprep.mubr.msk.f32.mxu0 %vm239_vm1, %v6155_v30 }
 0x130   : > { %4999 = vmatmul.mubr.msk.f32.vlgmr.msra.gmra.mrb[16].mxu1 %vm239_vm1, %v1869_v1  ;;  %5196 = vmatmul.mubr.msk.f32.gmra.mrb[14].mxu0 %vm239_vm1, %v6171_v38 }
 0x131   : > { %5001 = vmatprep.mubr.msk.f32.mxu1 %vm239_vm1, %v7034_v48  ;;  %5198 = vmatprep.mubr.msk.f32.mxu0 %vm239_vm1, %v6177_v40 }
 0x134   : > { %5002 = vmatmul.mubr.msk.f32.gmra.mrb[18].mxu1 %vm239_vm1, %v7036_v50  ;;  %5199 = vmatmul.mubr.msk.f32.gmra.mrb[16].mxu0 %vm239_vm1, %v6191_v42 }
 0x135   : > { %5004 = vmatprep.mubr.msk.f32.mxu1 %vm239_vm1, %v7038_v52  ;;  %5201 = vmatprep.mubr.msk.f32.mxu0 %vm239_vm1, %v6195_v45 }
 0x138   : > { %5005 = vmatmul.mubr.msk.f32.gmra.mrb[20].mxu1 %vm239_vm1, %v7040_v0  ;;  %5202 = vmatmul.mubr.msk.f32.gmra.mrb[18].mxu0 %vm239_vm1, %v6207_v47 }
 0x139   : > { %5007 = vmatprep.mubr.msk.f32.mxu1 %vm239_vm1, %v7042_v2  ;;  %5204 = vmatprep.mubr.msk.f32.mxu0 %vm239_vm1, %v6211_v58 }
 0x13c   : > { %5008 = vmatmul.mubr.msk.f32.gmra.mrb[22].mxu1 %vm239_vm1, %v7044_v17  ;;  %5205 = vmatmul.mubr.msk.f32.gmra.mrb[20].mxu0 %vm239_vm1, %v6223_v27 }
 0x13d   : > { %5010 = vmatprep.mubr.msk.f32.mxu1 %vm239_vm1, %v7046_v35  ;;  %5207 = vmatprep.mubr.msk.f32.mxu0 %vm239_vm1, %v6227_v23 }
 0x140   : > { %5011 = vmatmul.mubr.msk.f32.gmra.mrb[24].mxu1 %vm239_vm1, %v7048_v37  ;;  %5208 = vmatmul.mubr.msk.f32.gmra.mrb[22].mxu0 %vm239_vm1, %v6239_v19 }
 0x141   : > { %5013 = vmatprep.mubr.msk.f32.mxu1 %vm239_vm1, %v7050_v43  ;;  %5210 = vmatprep.mubr.msk.f32.mxu0 %vm239_vm1, %v6243_v15 }
 0x144   : > { %5014 = vmatmul.mubr.msk.f32.gmra.mrb[26].mxu1 %vm239_vm1, %v7052_v51  ;;  %5211 = vmatmul.mubr.msk.f32.gmra.mrb[24].mxu0 %vm239_vm1, %v6255_v11 }
 0x145   : > { %5016 = vmatprep.mubr.msk.f32.mxu1 %vm239_vm1, %v7053_v53  ;;  %5213 = vmatprep.mubr.msk.f32.mxu0 %vm239_vm1, %v6259_v6 }
 0x148   : > { %5017 = vmatmul.mubr.msk.f32.gmra.mrb[28].mxu1 %vm239_vm1, %v7055_v34  ;;  %5214 = vmatmul.mubr.msk.f32.gmra.mrb[26].mxu0 %vm239_vm1, %v7027_v32 }
 0x149   : > { %5019 = vmatprep.mubr.msk.f32.mxu1 %vm239_vm1, %v6574_v31  ;;  %5216 = vmatprep.mubr.msk.f32.mxu0 %vm239_vm1, %v7056_v56 }
 0x14c   : > { %5020 = vmatmul.mubr.msk.f32.gmra.mrb[30].mxu1 %vm239_vm1, %v6584_v36  ;;  %5217 = vmatmul.mubr.msk.f32.gmra.mrb[28].mxu0 %vm239_vm1, %v7057_v61 }
 0x14d   : > { %5219 = vmatprep.mubr.msk.f32.mxu0 %vm239_vm1, %v3445_v59 }
 0x150   : > { %5220 = vmatmul.mubr.msk.f32.gmra.mrb[30].mxu0 %vm239_vm1, %v3446_v62 }
 0x1c3   : > { %v4926_v5 = vpop.f32.mrb[0].mxu1 }
 0x1c4   : > { %v1661_v6 = vpop.f32.mrb[1].mxu1 }
 0x1c7   : > { %v4929_v7 = vpop.f32.mrb[2].mxu1 }
 0x1c8   : > { %v1671_v10 = vpop.f32.mrb[3].mxu1 }
 0x1cb   : > { %v4932_v11 = vpop.f32.mrb[4].mxu1 }
 0x1cc   : > { %v1681_v12 = vpop.f32.mrb[5].mxu1 }
 0x1cf   : > { %v4935_v13 = vpop.f32.mrb[6].mxu1 }
 0x1d0   : > { %v1691_v14 = vpop.f32.mrb[7].mxu1 }
 0x1d3   : > { %v4938_v15 = vpop.f32.mrb[8].mxu1 }
 0x1d4   : > { %v6729_v16 = vpop.f32.mrb[9].mxu1 }
 0x1d7   : > { %v6731_v18 = vpop.f32.mrb[10].mxu1 }
 0x1d8   : > { %v6733_v19 = vpop.f32.mrb[11].mxu1 }
 0x1db   : > { %v6735_v20 = vpop.f32.mrb[12].mxu1 }
 0x1dc   : > { %v6737_v21 = vpop.f32.mrb[13].mxu1 }
 0x1df   : > { %v6739_v22 = vpop.f32.mrb[14].mxu1 }
 0x1e0   : > { %v6741_v23 = vpop.f32.mrb[15].mxu1 }
 0x1e7   : > { %v5176_v26 = vpop.f32.mrb[0].mxu0 }
 0x1e8   : > { %v5224_v28 = vadd.f32 %v5176_v26, %v4926_v5  ;;  %v3614_v29 = vpop.f32.mrb[1].mxu0 }
 0x1e9   : > { %v5225_v30 = vadd.f32 %v3614_v29, %v1661_v6 }
 0x1ea   : > { %v3812_v33 = vadd.f32 %v5224_v28, %v6747_v24 }
 0x1eb   : > { %v3811_v38 = vadd.f32 %v5225_v30, %v6747_v24  ;;  %v5179_v39 = vpop.f32.mrb[2].mxu0 }
 0x1ec   : > { %v3885_v40 = vmul.f32 %v3812_v33, %v3812_v33  ;;  %3957 = vst [vmem:[%s6751_s26 + $0x8] sm:$0xff] %v3812_v33  ;;  %v5226_v8 = vadd.f32 %v5179_v39, %v4929_v7  ;;  %v3624_v42 = vpop.f32.mrb[3].mxu0 }
 0x1ed   : > { %v3844_v44 = vadd.f32 %v3812_v33, %v3811_v38  ;;  %v3884_v45 = vmul.f32 %v3811_v38, %v3811_v38  ;;  %3956 = vst [vmem:[%s6751_s26] sm:$0xff] %v3811_v38  ;;  %v5227_v46 = vadd.f32 %v3624_v42, %v1671_v10 }
 0x1ee   : > { %v3814_v47 = vadd.f32 %v5226_v8, %v6747_v24 }
 0x1ef   : > { %v3916_v57 = vadd.f32 %v3885_v40, %v3884_v45  ;;  %v3813_v58 = vadd.f32 %v5227_v46, %v6747_v24  ;;  %v5182_v25 = vpop.f32.mrb[4].mxu0 }
 0x1f0   : > { %3959 = vst [vmem:[%s6751_s26 + $0x18] sm:$0xff] %v3814_v47  ;;  %v5228_v27 = vadd.f32 %v5182_v25, %v4932_v11  ;;  %v3634_v63 = vpop.f32.mrb[5].mxu0  ;;  %v3887_v50 = vmul.f32 %v3814_v47, %v3814_v47 }
 0x1f1   : > { %v3845_v55 = vadd.f32 %v3844_v44, %v3813_v58  ;;  %v3886_v60 = vmul.f32 %v3813_v58, %v3813_v58  ;;  %3958 = vst [vmem:[%s6751_s26 + $0x10] sm:$0xff] %v3813_v58  ;;  %v5229_v32 = vadd.f32 %v3634_v63, %v1681_v12 }
 0x1f2   : > { %v3816_v48 = vadd.f32 %v5228_v27, %v6747_v24 }
 0x1f3   : > { %v3917_v52 = vadd.f32 %v3916_v57, %v3886_v60  ;;  %v3815_v0 = vadd.f32 %v5229_v32, %v6747_v24  ;;  %v3846_v2 = vadd.f32 %v3845_v55, %v3814_v47  ;;  %v5185_v17 = vpop.f32.mrb[6].mxu0 }
 0x1f4   : > { %3961 = vst [vmem:[%s6751_s26 + $0x28] sm:$0xff] %v3816_v48  ;;  %v5230_v35 = vadd.f32 %v5185_v17, %v4935_v13  ;;  %v3644_v37 = vpop.f32.mrb[7].mxu0  ;;  %v3889_v4 = vmul.f32 %v3816_v48, %v3816_v48 }
 0x1f5   : > { %v3847_v43 = vadd.f32 %v3846_v2, %v3815_v0  ;;  %v3888_v49 = vmul.f32 %v3815_v0, %v3815_v0  ;;  %v3918_v51 = vadd.f32 %v3917_v52, %v3887_v50  ;;  %3960 = vst [vmem:[%s6751_s26 + $0x20] sm:$0xff] %v3815_v0  ;;  %v5231_v53 = vadd.f32 %v3644_v37, %v1691_v14 }
 0x1f6   : > { %v3818_v31 = vadd.f32 %v5230_v35, %v6747_v24 }
 0x1f7   : > { %v3919_v34 = vadd.f32 %v3918_v51, %v3888_v49  ;;  %v3817_v36 = vadd.f32 %v5231_v53, %v6747_v24  ;;  %v3848_v9 = vadd.f32 %v3847_v43, %v3816_v48  ;;  %v5188_v41 = vpop.f32.mrb[8].mxu0 }
 0x1f8   : > { %3963 = vst [vmem:[%s6751_s26 + $0x38] sm:$0xff] %v3818_v31  ;;  %v5232_v54 = vadd.f32 %v5188_v41, %v4938_v15  ;;  %v3654_v1 = vpop.f32.mrb[9].mxu0  ;;  %v3891_v5 = vmul.f32 %v3818_v31, %v3818_v31 }
 0x1f9   : > { %v3849_v56 = vadd.f32 %v3848_v9, %v3817_v36  ;;  %v3890_v59 = vmul.f32 %v3817_v36, %v3817_v36  ;;  %v3920_v61 = vadd.f32 %v3919_v34, %v3889_v4  ;;  %3962 = vst [vmem:[%s6751_s26 + $0x30] sm:$0xff] %v3817_v36  ;;  %v5233_v62 = vadd.f32 %v3654_v1, %v6729_v16 }
 0x1fa   : > { %v3820_v3 = vadd.f32 %v5232_v54, %v6747_v24 }
 0x1fb   : > { %v3921_v6 = vadd.f32 %v3920_v61, %v3890_v59  ;;  %v3819_v7 = vadd.f32 %v5233_v62, %v6747_v24  ;;  %v3850_v10 = vadd.f32 %v3849_v56, %v3818_v31  ;;  %v5191_v11 = vpop.f32.mrb[10].mxu0 }
 0x1fc   : > { %3965 = vst [vmem:[%s6751_s26 + $0x48] sm:$0xff] %v3820_v3  ;;  %v5234_v12 = vadd.f32 %v5191_v11, %v6731_v18  ;;  %v3664_v13 = vpop.f32.mrb[11].mxu0  ;;  %v3893_v29 = vmul.f32 %v3820_v3, %v3820_v3 }
 0x1fd   : > { %v3851_v14 = vadd.f32 %v3850_v10, %v3819_v7  ;;  %v3892_v15 = vmul.f32 %v3819_v7, %v3819_v7  ;;  %v3922_v26 = vadd.f32 %v3921_v6, %v3891_v5  ;;  %3964 = vst [vmem:[%s6751_s26 + $0x40] sm:$0xff] %v3819_v7  ;;  %v5235_v16 = vadd.f32 %v3664_v13, %v6733_v19 }
 0x1fe   : > { %v3822_v28 = vadd.f32 %v5234_v12, %v6747_v24 }
 0x1ff   : > { %v3923_v30 = vadd.f32 %v3922_v26, %v3892_v15  ;;  %v3821_v33 = vadd.f32 %v5235_v16, %v6747_v24  ;;  %v3852_v38 = vadd.f32 %v3851_v14, %v3820_v3  ;;  %v5194_v39 = vpop.f32.mrb[12].mxu0 }
 0x200   : > { %3967 = vst [vmem:[%s6751_s26 + $0x58] sm:$0xff] %v3822_v28  ;;  %v5236_v18 = vadd.f32 %v5194_v39, %v6735_v20  ;;  %v3674_v40 = vpop.f32.mrb[13].mxu0  ;;  %v3895_v46 = vmul.f32 %v3822_v28, %v3822_v28 }
 0x201   : > { %v3853_v8 = vadd.f32 %v3852_v38, %v3821_v33  ;;  %v3894_v42 = vmul.f32 %v3821_v33, %v3821_v33  ;;  %v3924_v44 = vadd.f32 %v3923_v30, %v3893_v29  ;;  %3966 = vst [vmem:[%s6751_s26 + $0x50] sm:$0xff] %v3821_v33  ;;  %v5237_v19 = vadd.f32 %v3674_v40, %v6737_v21 }
 0x202   : > { %v3824_v45 = vadd.f32 %v5236_v18, %v6747_v24 }
 0x203   : > { %v3925_v47 = vadd.f32 %v3924_v44, %v3894_v42  ;;  %v3823_v57 = vadd.f32 %v5237_v19, %v6747_v24  ;;  %v3854_v58 = vadd.f32 %v3853_v8, %v3822_v28  ;;  %v5000_v25 = vpop.f32.mrb[16].mxu1  ;;  %v5197_v27 = vpop.f32.mrb[14].mxu0 }
 0x204   : > { %3969 = vst [vmem:[%s6751_s26 + $0x68] sm:$0xff] %v3824_v45  ;;  %v5238_v20 = vadd.f32 %v5197_v27, %v6739_v22  ;;  %v2131_v63 = vpop.f32.mrb[17].mxu1  ;;  %v3684_v55 = vpop.f32.mrb[15].mxu0  ;;  %v3897_v52 = vmul.f32 %v3824_v45, %v3824_v45 }
 0x205   : > { %v3855_v60 = vadd.f32 %v3854_v58, %v3823_v57  ;;  %v3896_v32 = vmul.f32 %v3823_v57, %v3823_v57  ;;  %v3926_v48 = vadd.f32 %v3925_v47, %v3895_v46  ;;  %3968 = vst [vmem:[%s6751_s26 + $0x60] sm:$0xff] %v3823_v57  ;;  %v5239_v21 = vadd.f32 %v3684_v55, %v6741_v23 }
 0x206   : > { %v3826_v50 = vadd.f32 %v5238_v20, %v6747_v24 }
 0x207   : > { %v3927_v0 = vadd.f32 %v3926_v48, %v3896_v32  ;;  %v3825_v2 = vadd.f32 %v5239_v21, %v6747_v24  ;;  %v3856_v17 = vadd.f32 %v3855_v60, %v3824_v45  ;;  %v5003_v35 = vpop.f32.mrb[18].mxu1  ;;  %v5200_v37 = vpop.f32.mrb[16].mxu0 }
 0x208   : > { %3971 = vst [vmem:[%s6751_s26 + $0x78] sm:$0xff] %v3826_v50  ;;  %v5240_v22 = vadd.f32 %v5200_v37, %v5000_v25  ;;  %v2141_v43 = vpop.f32.mrb[19].mxu1  ;;  %v3694_v49 = vpop.f32.mrb[17].mxu0  ;;  %v3899_v34 = vmul.f32 %v3826_v50, %v3826_v50 }
 0x209   : > { %v3857_v51 = vadd.f32 %v3856_v17, %v3825_v2  ;;  %v3898_v53 = vmul.f32 %v3825_v2, %v3825_v2  ;;  %v3928_v31 = vadd.f32 %v3927_v0, %v3897_v52  ;;  %3970 = vst [vmem:[%s6751_s26 + $0x70] sm:$0xff] %v3825_v2  ;;  %v5241_v23 = vadd.f32 %v3694_v49, %v2131_v63 }
 0x20a   : > { %v3828_v4 = vadd.f32 %v5240_v22, %v6747_v24 }
 0x20b   : > { %v3929_v36 = vadd.f32 %v3928_v31, %v3898_v53  ;;  %v3827_v9 = vadd.f32 %v5241_v23, %v6747_v24  ;;  %v3858_v41 = vadd.f32 %v3857_v51, %v3826_v50  ;;  %v5006_v54 = vpop.f32.mrb[20].mxu1  ;;  %v5203_v1 = vpop.f32.mrb[18].mxu0 }
 0x20c   : > { %3973 = vst [vmem:[%s6751_s26 + $0x88] sm:$0xff] %v3828_v4  ;;  %v5242_v56 = vadd.f32 %v5203_v1, %v5003_v35  ;;  %v2151_v59 = vpop.f32.mrb[21].mxu1  ;;  %v3704_v61 = vpop.f32.mrb[19].mxu0  ;;  %v3901_v10 = vmul.f32 %v3828_v4, %v3828_v4 }
 0x20d   : > { %v3859_v62 = vadd.f32 %v3858_v41, %v3827_v9  ;;  %v3900_v3 = vmul.f32 %v3827_v9, %v3827_v9  ;;  %v3930_v5 = vadd.f32 %v3929_v36, %v3899_v34  ;;  %3972 = vst [vmem:[%s6751_s26 + $0x80] sm:$0xff] %v3827_v9  ;;  %v5243_v6 = vadd.f32 %v3704_v61, %v2141_v43 }
 0x20e   : > { %v3830_v7 = vadd.f32 %v5242_v56, %v6747_v24 }
 0x20f   : > { %v3931_v11 = vadd.f32 %v3930_v5, %v3900_v3  ;;  %v3829_v12 = vadd.f32 %v5243_v6, %v6747_v24  ;;  %v3860_v13 = vadd.f32 %v3859_v62, %v3828_v4  ;;  %v5009_v14 = vpop.f32.mrb[22].mxu1  ;;  %v5206_v15 = vpop.f32.mrb[20].mxu0 }
 0x210   : > { %3975 = vst [vmem:[%s6751_s26 + $0x98] sm:$0xff] %v3830_v7  ;;  %v5244_v26 = vadd.f32 %v5206_v15, %v5006_v54  ;;  %v2161_v16 = vpop.f32.mrb[23].mxu1  ;;  %v3714_v28 = vpop.f32.mrb[21].mxu0  ;;  %v3903_v18 = vmul.f32 %v3830_v7, %v3830_v7 }
 0x211   : > { %v3861_v29 = vadd.f32 %v3860_v13, %v3829_v12  ;;  %v3902_v30 = vmul.f32 %v3829_v12, %v3829_v12  ;;  %v3932_v33 = vadd.f32 %v3931_v11, %v3901_v10  ;;  %3974 = vst [vmem:[%s6751_s26 + $0x90] sm:$0xff] %v3829_v12  ;;  %v5245_v38 = vadd.f32 %v3714_v28, %v2151_v59 }
 0x212   : > { %v3832_v39 = vadd.f32 %v5244_v26, %v6747_v24 }
 0x213   : > { %v3933_v40 = vadd.f32 %v3932_v33, %v3902_v30  ;;  %v3831_v8 = vadd.f32 %v5245_v38, %v6747_v24  ;;  %v3862_v42 = vadd.f32 %v3861_v29, %v3830_v7  ;;  %v5012_v44 = vpop.f32.mrb[24].mxu1  ;;  %v5209_v19 = vpop.f32.mrb[22].mxu0 }
 0x214   : > { %3977 = vst [vmem:[%s6751_s26 + $0xa8] sm:$0xff] %v3832_v39  ;;  %v5246_v45 = vadd.f32 %v5209_v19, %v5009_v14  ;;  %v2171_v46 = vpop.f32.mrb[25].mxu1  ;;  %v3724_v47 = vpop.f32.mrb[23].mxu0  ;;  %v3905_v63 = vmul.f32 %v3832_v39, %v3832_v39 }
 0x215   : > { %v3863_v57 = vadd.f32 %v3862_v42, %v3831_v8  ;;  %v3904_v58 = vmul.f32 %v3831_v8, %v3831_v8  ;;  %v3934_v25 = vadd.f32 %v3933_v40, %v3903_v18  ;;  %3976 = vst [vmem:[%s6751_s26 + $0xa0] sm:$0xff] %v3831_v8  ;;  %v5247_v27 = vadd.f32 %v3724_v47, %v2161_v16 }
 0x216   : > { %v3834_v20 = vadd.f32 %v5246_v45, %v6747_v24 }
 0x217   : > { %v3935_v55 = vadd.f32 %v3934_v25, %v3904_v58  ;;  %v3833_v60 = vadd.f32 %v5247_v27, %v6747_v24  ;;  %v3864_v32 = vadd.f32 %v3863_v57, %v3832_v39  ;;  %v5015_v48 = vpop.f32.mrb[26].mxu1  ;;  %v5212_v21 = vpop.f32.mrb[24].mxu0 }
 0x218   : > { %3979 = vst [vmem:[%s6751_s26 + $0xb8] sm:$0xff] %v3834_v20  ;;  %v5248_v50 = vadd.f32 %v5212_v21, %v5012_v44  ;;  %v2181_v52 = vpop.f32.mrb[27].mxu1  ;;  %v3734_v0 = vpop.f32.mrb[25].mxu0  ;;  %v3907_v43 = vmul.f32 %v3834_v20, %v3834_v20 }
 0x219   : > { %v3865_v2 = vadd.f32 %v3864_v32, %v3833_v60  ;;  %v3906_v17 = vmul.f32 %v3833_v60, %v3833_v60  ;;  %v3936_v35 = vadd.f32 %v3935_v55, %v3905_v63  ;;  %3978 = vst [vmem:[%s6751_s26 + $0xb0] sm:$0xff] %v3833_v60  ;;  %v5249_v37 = vadd.f32 %v3734_v0, %v2171_v46 }
 0x21a   : > { %v3836_v22 = vadd.f32 %v5248_v50, %v6747_v24 }
 0x21b   : > { %v3937_v49 = vadd.f32 %v3936_v35, %v3906_v17  ;;  %v3835_v51 = vadd.f32 %v5249_v37, %v6747_v24  ;;  %v3866_v53 = vadd.f32 %v3865_v2, %v3834_v20  ;;  %v5018_v31 = vpop.f32.mrb[28].mxu1  ;;  %v5215_v23 = vpop.f32.mrb[26].mxu0 }
 0x21c   : > { %3981 = vst [vmem:[%s6751_s26 + $0xc8] sm:$0xff] %v3836_v22  ;;  %v5250_v4 = vadd.f32 %v5215_v23, %v5015_v48  ;;  %v2191_v34 = vpop.f32.mrb[29].mxu1  ;;  %v3744_v36 = vpop.f32.mrb[27].mxu0  ;;  %v3909_v59 = vmul.f32 %v3836_v22, %v3836_v22 }
 0x21d   : > { %v3867_v9 = vadd.f32 %v3866_v53, %v3835_v51  ;;  %v3908_v41 = vmul.f32 %v3835_v51, %v3835_v51  ;;  %v3938_v54 = vadd.f32 %v3937_v49, %v3907_v43  ;;  %3980 = vst [vmem:[%s6751_s26 + $0xc0] sm:$0xff] %v3835_v51  ;;  %v5251_v1 = vadd.f32 %v3744_v36, %v2181_v52 }
 0x21e   : > { %v3838_v56 = vadd.f32 %v5250_v4, %v6747_v24 }
 0x21f   : > { %v3939_v61 = vadd.f32 %v3938_v54, %v3908_v41  ;;  %v3837_v62 = vadd.f32 %v5251_v1, %v6747_v24  ;;  %v3868_v3 = vadd.f32 %v3867_v9, %v3836_v22  ;;  %v5021_v5 = vpop.f32.mrb[30].mxu1  ;;  %v5218_v6 = vpop.f32.mrb[28].mxu0 }
 0x220   : > { %3983 = vst [vmem:[%s6751_s26 + $0xd8] sm:$0xff] %v3838_v56  ;;  %v5252_v7 = vadd.f32 %v5218_v6, %v5018_v31  ;;  %v2201_v10 = vpop.f32.mrb[31].mxu1  ;;  %v3754_v11 = vpop.f32.mrb[29].mxu0  ;;  %v3911_v16 = vmul.f32 %v3838_v56, %v3838_v56 }
 0x221   : > { %v3869_v12 = vadd.f32 %v3868_v3, %v3837_v62  ;;  %v3910_v13 = vmul.f32 %v3837_v62, %v3837_v62  ;;  %v3940_v14 = vadd.f32 %v3939_v61, %v3909_v59  ;;  %3982 = vst [vmem:[%s6751_s26 + $0xd0] sm:$0xff] %v3837_v62  ;;  %v5253_v15 = vadd.f32 %v3754_v11, %v2191_v34 }
 0x222   : > { %v3840_v26 = vadd.f32 %v5252_v7, %v6747_v24 }
 0x223   : > { %v3941_v28 = vadd.f32 %v3940_v14, %v3910_v13  ;;  %v3839_v29 = vadd.f32 %v5253_v15, %v6747_v24  ;;  %v3870_v30 = vadd.f32 %v3869_v12, %v3838_v56  ;;  %v5221_v33 = vpop.f32.mrb[30].mxu0 }
 0x224   : > { %3985 = vst [vmem:[%s6751_s26 + $0xe8] sm:$0xff] %v3840_v26  ;;  %v5254_v38 = vadd.f32 %v5221_v33, %v5021_v5  ;;  %v3764_v39 = vpop.f32.mrb[31].mxu0  ;;  %v3913_v19 = vmul.f32 %v3840_v26, %v3840_v26 }
 0x225   : > { %v3871_v18 = vadd.f32 %v3870_v30, %v3839_v29  ;;  %v3912_v40 = vmul.f32 %v3839_v29, %v3839_v29  ;;  %v3942_v8 = vadd.f32 %v3941_v28, %v3911_v16  ;;  %3984 = vst [vmem:[%s6751_s26 + $0xe0] sm:$0xff] %v3839_v29  ;;  %v5255_v42 = vadd.f32 %v3764_v39, %v2201_v10 }
 0x226   : > { %v3842_v44 = vadd.f32 %v5254_v38, %v6747_v24 }
 0x227   : > { %v3943_v45 = vadd.f32 %v3942_v8, %v3912_v40  ;;  %v3841_v46 = vadd.f32 %v5255_v42, %v6747_v24  ;;  %v3872_v47 = vadd.f32 %v3871_v18, %v3840_v26 }
 0x228   : > { %3987 = vst [vmem:[%s6751_s26 + $0xf8] sm:$0xff] %v3842_v44 }
 0x229   : > { %v3873_v57 = vadd.f32 %v3872_v47, %v3841_v46  ;;  %v3914_v58 = vmul.f32 %v3841_v46, %v3841_v46  ;;  %v3944_v25 = vadd.f32 %v3943_v45, %v3913_v19  ;;  %3986 = vst [vmem:[%s6751_s26 + $0xf0] sm:$0xff] %v3841_v46 }
 0x22a   : > { %5545 = shalt.err (!%p5542_p3)
}
 0x22b   : > { %s5546_s25 = scalar_lea.hbm %s6824_s9, 4096  ;;  %s5550_s7 = scalar_lea.hbm %s6945_s3, 8192 }
 0x22c   : > { %p5547_p4 = scmp.ne.s32.totalorder %s6824_s9, %s5546_s25  ;;  %p5551_p9 = scmp.lt.u32.totalorder %s6824_s9, %s6945_s3 }
 0x22d   : > { %p5552_p10 = scmp.lt.u32.totalorder %s5550_s7, %s5546_s25  ;;  %p5554_p12 = scmp.lt.u32.totalorder %s5546_s25, %s6824_s9 }
 0x22e   : > { %p5548_p7 = pnand %p5547_p4, %p5732_p5 }
 0x22f   : > { %p5553_p11 = por %p5552_p10, %p5551_p9 }
 0x230   : > { %p5549_p8 = pneg %p5548_p7 }
 0x231   : > { %p5555_p13 = por %p5554_p12, %p5553_p11 }
 0x233   : > { %p5556_p0 = pnand %p5555_p13, %p5549_p8 }
 0x235   : > { %5559 = shalt.err (!%p5556_p0)
}
 0x236   : > { %s5658_s11 = smov 128   ;;  %s5659_s16 = smov 8   ;;  %v3915_v24 = vmul.f32 %v3842_v44, %v3842_v44  ;;  %v3874_v27 = vadd.f32 %v3873_v57, %v3842_v44  ;;  %v3945_v20 = vadd.f32 %v3944_v25, %v3914_v58  ;;  %v3843_v17 = vld [vmem:[%s6720_s14] sm:$0x1] }
 0x237   : > { %5480 = dma.vmem_to_hbm [thread:$0]  (%p5732_p5), %s6826_s6, 4096, %s6824_s9, %s3989_s10, %s5658_s11, %s5658_s11, %s5659_s16  }
 0x238   : > { %v3875_v63 = vrot.slane %v3874_v27, 4  ;;  %v3946_v55 = vadd.f32 %v3945_v20, %v3915_v24  ;;  %s3993_s13 = sand.u32 1, %s5713_s22   ;;  %s4469_s6 = sshll.u32 %s5713_s22, 4  ;;  %v3883_v22 = vld [vmem:[%s6725_s15] sm:$0x1] }
 0x239   : > { %s4026_s9 = sshll.u32 %s6720_s14, 4  ;;  %s4039_s10 = sshll.u32 %s6725_s15, 4  ;;  %s6866_s9 = int_to_ptr.vmem [resolvable:$true] %s4026_s9  ;;  %s6874_s10 = int_to_ptr.vmem [resolvable:$true] %s4039_s10 }
 0x23a   : > { %v3876_v60 = vadd.f32 %v3875_v63, %v3874_v27  ;;  %v3947_v32 = vrot.slane %v3946_v55, 4  ;;  %s6864_s26 = scalar_lea.hbm %s6946_s4, %s4469_s6  ;;  %s6872_s7 = scalar_lea.hbm %s6947_s5, %s4469_s6 }
 0x23b   : > { %s6876_s8 = scalar_lea.sflag [#allocation6], %s3993_s13  ;;  %s5560_s12 = scalar_lea.vmem %s6866_s9, 16 }
 0x23c   : > { %v3877_v48 = vrot.slane %v3876_v60, 2  ;;  %v3948_v21 = vadd.f32 %v3947_v32, %v3946_v55  ;;  %p5561_p1 = scmp.ne.s32.totalorder %s6866_s9, %s5560_s12  ;;  %s5660_s11 = smov [#allocation5]  }
 0x23d   : > { %s5564_s16 = sshll.u32 %s5660_s11, 4  ;;  %s5565_s16 = int_to_ptr.vmem [resolvable:$false] %s5564_s16 }
 0x23e   : > { %v3949_v50 = vrot.slane %v3948_v21, 2  ;;  %v3878_v52 = vadd.f32 %v3877_v48, %v3876_v60  ;;  %p5562_p2 = pnand %p5561_p1, %p5732_p5  ;;  %s5566_s17 = scalar_lea.vmem %s5565_s16, 32 }
 0x23f   : > { %p5567_p4 = scmp.lt.s32.totalorder %s6866_s9, %s5565_s16  ;;  %p5568_p7 = scmp.lt.s32.totalorder %s5566_s17, %s5560_s12 }
 0x240   : > { %v3879_v0 = vrot.slane %v3878_v52, 1  ;;  %v3950_v2 = vadd.f32 %v3949_v50, %v3948_v21  ;;  %p5563_p3 = pneg %p5562_p2 }
 0x241   : > { %p5569_p8 = por %p5568_p7, %p5567_p4 }
 0x242   : > { %v3880_v35 = vadd.f32 %v3879_v0, %v3878_v52  ;;  %v3951_v37 = vrot.slane %v3950_v2, 1 }
 0x243   : > { %p5570_p9 = pnand %p5569_p8, %p5563_p3 }
 0x244   : > { %v3881_v43 = vadd.f32 %v3880_v35, %v3843_v17  ;;  %v3952_v49 = vadd.f32 %v3951_v37, %v3950_v2 }
 0x246   : > { %3882 = vst [vmem:[%s6720_s14] sm:$0x1] %v3881_v43  ;;  %v3953_v51 = vadd.f32 %v3952_v49, %v3883_v22 }
 0x247   : > { %5573 = shalt.err (!%p5570_p9)
}
 0x248   : > { %s5574_s14 = scalar_lea.hbm %s6864_s26, 16  ;;  %s5578_s25 = scalar_lea.hbm %s6946_s4, 32 }
 0x249   : > { %p5575_p10 = scmp.ne.s32.totalorder %s6864_s26, %s5574_s14  ;;  %p5579_p13 = scmp.lt.u32.totalorder %s6864_s26, %s6946_s4 }
 0x24a   : > { %p5580_p0 = scmp.lt.u32.totalorder %s5578_s25, %s5574_s14  ;;  %p5582_p2 = scmp.lt.u32.totalorder %s5574_s14, %s6864_s26 }
 0x24b   : > { %p5576_p11 = pnand %p5575_p10, %p5732_p5 }
 0x24c   : > { %p5581_p1 = por %p5580_p0, %p5579_p13 }
 0x24d   : > { %p5577_p12 = pneg %p5576_p11 }
 0x24e   : > { %p5583_p3 = por %p5582_p2, %p5581_p1 }
 0x250   : > { %p5584_p4 = pnand %p5583_p3, %p5577_p12 }
 0x252   : > { %5587 = shalt.err (!%p5584_p4)
}
 0x253   : > { %5481 = dma.vmem_to_hbm [thread:$0]  (%p5732_p5), %s6866_s9, 16, %s6864_s26, %s6876_s8   ;;  %3954 = vst [vmem:[%s6725_s15] sm:$0x1] %v3953_v51 }
 0x254   : > { %s5588_s12 = scalar_lea.vmem %s6874_s10, 16  ;;  %s5661_s11 = smov [#allocation7]  }
 0x255   : > { %p5589_p7 = scmp.ne.s32.totalorder %s6874_s10, %s5588_s12  ;;  %s5592_s16 = sshll.u32 %s5661_s11, 4  ;;  %s5593_s16 = int_to_ptr.vmem [resolvable:$false] %s5592_s16 }
 0x256   : > { %s5594_s17 = scalar_lea.vmem %s5593_s16, 32  ;;  %p5595_p10 = scmp.lt.s32.totalorder %s6874_s10, %s5593_s16 }
 0x257   : > { %p5590_p8 = pnand %p5589_p7, %p5732_p5  ;;  %p5596_p11 = scmp.lt.s32.totalorder %s5594_s17, %s5588_s12 }
 0x259   : > { %p5591_p9 = pneg %p5590_p8  ;;  %p5597_p12 = por %p5596_p11, %p5595_p10 }
 0x25b   : > { %p5598_p13 = pnand %p5597_p12, %p5591_p9 }
 0x25d   : > { %5601 = shalt.err (!%p5598_p13)
}
 0x25e   : > { %s5602_s15 = scalar_lea.hbm %s6872_s7, 16  ;;  %s5606_s14 = scalar_lea.hbm %s6947_s5, 32 }
 0x25f   : > { %p5603_p0 = scmp.ne.s32.totalorder %s6872_s7, %s5602_s15  ;;  %p5607_p3 = scmp.lt.u32.totalorder %s6872_s7, %s6947_s5 }
 0x260   : > { %p5608_p4 = scmp.lt.u32.totalorder %s5606_s14, %s5602_s15  ;;  %p5610_p8 = scmp.lt.u32.totalorder %s5602_s15, %s6872_s7 }
 0x261   : > { %p5604_p1 = pnand %p5603_p0, %p5732_p5 }
 0x262   : > { %p5609_p7 = por %p5608_p4, %p5607_p3 }
 0x263   : > { %p5605_p2 = pneg %p5604_p1 }
 0x264   : > { %p5611_p9 = por %p5610_p8, %p5609_p7 }
 0x266   : > { %p5612_p10 = pnand %p5611_p9, %p5605_p2 }
 0x268   : > { %5615 = shalt.err (!%p5612_p10)
}
 0x269   : > { %5482 = dma.vmem_to_hbm [thread:$0]  (%p5732_p5), %s6874_s10, 16, %s6872_s7, %s6876_s8  }
 0x26a PF: > { %p5496_p11 = scmp.ge.s32.totalorder %s5654_s21, 2  ;;  %s4051_s25 = sand.u32 1, %s5642_s18  }
 0x26b   : > { %s4052_s22 = scalar_lea.sflag [#allocation4], %s4051_s25 }
 0x26c   : > { %p5487_p12 = pnand %p5496_p11, %p5736_p6 }
 0x26e   : > { %5633 = dma.done.wait (!%p5487_p12), %s4052_s22, 4096  }
 0x26f   : > { %5635 = vsyncadd (!%p5487_p12), %s4052_s22, 4294963200  ;;  %s4060_s30 = sand.u32 1, %s4153_s23  }
 0x270   : > { %s4061_s12 = scalar_lea.sflag [#allocation6], %s4060_s30 }
 0x271   : > { %5637 = dma.done.wait (!%p5487_p12), %s4061_s12, 32  }
 0x272   : > { %5639 = vsyncadd (!%p5487_p12), %s4061_s12, 4294967264  ;;  %p19_p5 = scmp.ge.s32.totalorder %s5717_s24, 4   ;;  %s7059_s18 = smov %s5646_s19 }
 0x273   : > { %s7060_s19 = smov %s5650_s20  ;;  %s7061_s20 = smov %s5730_s27 }
 0x274   : > { %s7062_s21 = smov %s5717_s24  ;;  %21 = sbr.rel (!%p19_p5) target bundleno = 5 (0x5), region = 114 }
 0x27b   :  { %4073 = vsyncpa [#allocation4], 1 }
 0x27c   :  { %4075 = vsyncpa [#allocation4 + $0x1], 1 }
 0x27d   :  { %4076 = vsyncpa [#allocation6], 1 }
 0x27e   :  { %4078 = vsyncpa [#allocation6 + $0x1], 1 }

</bundles_post_ra>
